<compile_context>
chip_gen: v6e
topology: v6e:2x2x1
jax: 0.10.0
libtpu: 0.0.40
codegen_flags: <defaults>
</compile_context>

<pallas_src>
import jax
import jax.numpy as jnp
import numpy as np
from jax.experimental import pallas as pl
from jax.experimental.pallas import tpu as pltpu


# ------------------------------ helpers -------------------------------------

def _rup(x, m=128):
    return ((x + m - 1) // m) * m


def _pick_row_block(h, target=8):
    th = max(1, min(target, h))
    while h % th:
        th -= 1
    return th


def _pad_last(a, target):
    d = target - a.shape[-1]
    if d == 0:
        return a
    return jnp.pad(a, [(0, 0)] * (a.ndim - 1) + [(0, d)])


def _pad_last2(a, t0, t1):
    d0, d1 = t0 - a.shape[-2], t1 - a.shape[-1]
    if d0 == 0 and d1 == 0:
        return a
    return jnp.pad(a, [(0, 0)] * (a.ndim - 2) + [(0, d0), (0, d1)])


# ---------------------------- fused Pallas kernel ---------------------------

def _bottleneck_kernel(x_ref, w1_ref, b1_ref, w2_ref, b2_ref, w3_ref, b3_ref,
                       o_ref):
    # x_ref : (1, 1, TH+2, Wp2, Cp)  bf16 spatial tile incl. 1-row halo + zero pad
    # w*    : BN-folded conv weights (bf16), b*: BN biases (f32, shape (1, C))
    # o_ref : (1, TH, W, Cop) f32
    _, _, thp2, wp2, cp = x_ref.shape
    _, th, w, cop = o_ref.shape
    wd = w1_ref.shape[1]

    xt = x_ref[...].reshape(thp2, wp2, cp)                 # bf16 tile

    # ---- conv1 (1x1) + bn1 + relu, computed for every tile pixel (halo too)
    h1 = jnp.dot(xt.reshape(thp2 * wp2, cp), w1_ref[...],
                 preferred_element_type=jnp.float32)
    h1 = jnp.maximum(h1 + b1_ref[...], 0.0).reshape(thp2, wp2, wd)

    # ---- zero the pixels that are conv2's zero padding (image border / W pad)
    r = pl.program_id(1)
    h_img = pl.num_programs(1) * th
    lr = jax.lax.broadcasted_iota(jnp.int32, (thp2, wp2, wd), 0)
    lc = jax.lax.broadcasted_iota(jnp.int32, (thp2, wp2, wd), 1)
    grow = lr + r * th                                     # global padded row id
    valid = (lc >= 1) & (lc <= w) & (grow >= 1) & (grow <= h_img)
    h1 = jnp.where(valid, h1, 0.0).astype(xt.dtype)        # back to bf16

    # ---- conv2 (3x3, stride 1, pad 1): 9 shifted VMEM views -> one K=9*C matmul
    taps = jnp.concatenate(
        [h1[ky:ky + th, kx:kx + w, :] for ky in range(3) for kx in range(3)],
        axis=-1).reshape(th * w, 9 * wd)
    h2 = jnp.dot(taps, w2_ref[...], preferred_element_type=jnp.float32)
    h2 = jnp.maximum(h2 + b2_ref[...], 0.0).astype(xt.dtype)

    # ---- conv3 (1x1) + bn3 + identity residual + relu (f32 epilogue)
    res = xt[1:th + 1, 1:w + 1, :].reshape(th * w, cp).astype(jnp.float32)
    y = jnp.dot(h2, w3_ref[...], preferred_element_type=jnp.float32)
    y = jnp.maximum(y + b3_ref[...] + res, 0.0)
    o_ref[...] = y.reshape(1, th, w, cop).astype(o_ref.dtype)


# ------------------------------ forward -------------------------------------

def bottleneck_forward(x_nchw, fp, row_block=8):
    N, Cin, H, W = x_nchw.shape
    width = fp["w1"].shape[1]
    cout = fp["w3"].shape[1]
    assert cout == Cin, "downsample=None requires inplanes == planes*expansion"

    TH = _pick_row_block(H, row_block)          # output rows per grid step
    R = H // TH
    Cp, Wd, Cop = _rup(Cin), _rup(width), _rup(cout)
    Wp2 = _rup(W + 2, 8)                        # sublane-aligned padded width

    # NHWC, channel pad to 128 lanes, bf16, spatial zero pad (top/left 1 px,
    # right pad up to Wp2). Layout plumbing stays in XLA glue.
    x = jnp.transpose(x_nchw, (0, 2, 3, 1))
    x = _pad_last(x, Cp).astype(jnp.bfloat16)
    xp = jnp.pad(x, ((0, 0), (1, 1), (1, Wp2 - W - 1), (0, 0)))
    # Row tiles carrying a 1-row halo each side (~(TH+2)/TH duplication only,
    # instead of a 9x im2col blow-up).
    x_tiles = jnp.stack([xp[:, r * TH:r * TH + TH + 2] for r in range(R)],
                        axis=1)                 # (N, R, TH+2, Wp2, Cp)

    # BN scale already folded into the weights; pad channels, cast to bf16,
    # and lay the 3x3 taps along K: (9, C, C) -> (9*C, C).
    w1 = _pad_last2(fp["w1"], Cp, Wd).astype(jnp.bfloat16)
    w2 = _pad_last2(fp["w2"], Wd, Wd).reshape(9 * Wd, Wd).astype(jnp.bfloat16)
    w3 = _pad_last2(fp["w3"], Wd, Cop).astype(jnp.bfloat16)
    b1 = _pad_last(fp["b1"], Wd)
    b2 = _pad_last(fp["b2"], Wd)
    b3 = _pad_last(fp["b3"], Cop)

    const = lambda n, r: (0, 0)                 # weights stay VMEM-resident
    grid_spec = pltpu.PrefetchScalarGridSpec(
        num_scalar_prefetch=0,
        grid=(N, R),
        in_specs=[
            pl.BlockSpec((1, 1, TH + 2, Wp2, Cp), lambda n, r: (n, r, 0, 0, 0)),
            pl.BlockSpec((Cp, Wd), const),
            pl.BlockSpec((1, Wd), const),
            pl.BlockSpec((9 * Wd, Wd), const),
            pl.BlockSpec((1, Wd), const),
            pl.BlockSpec((Wd, Cop), const),
            pl.BlockSpec((1, Cop), const),
        ],
        out_specs=pl.BlockSpec((1, TH, W, Cop), lambda n, r: (n, r, 0, 0)),
    )

    # VMEM budget: double-buffered tiles + resident weights + intermediates.
    tile_in = (TH + 2) * Wp2 * Cp * 2
    tile_out = TH * W * Cop * 4
    wgt = (Cp * Wd + 9 * Wd * Wd + Wd * Cop) * 2 + (2 * Wd + Cop) * 4
    inter = (TH + 2) * Wp2 * Wd * 6 + TH * W * (9 * Wd * 2 + Wd * 6 + Cop * 4)
    vmem_limit = int(min(max(2 * (tile_in + tile_out + wgt) + 2 * inter
                             + (4 << 20), 8 << 20), 48 << 20))

    flops = 2 * N * H * W * (Cin * width + 9 * width * width + width * cout)
    bytes_accessed = int(x_tiles.size * 2 + N * H * W * Cop * 4
                         + (w1.size + w2.size + w3.size) * 2)

    out = pl.pallas_call(
        _bottleneck_kernel,
        out_shape=jax.ShapeDtypeStruct((N, H, W, Cop), jnp.float32),
        grid_spec=grid_spec,
        compiler_params=pltpu.CompilerParams(
            dimension_semantics=("parallel", "parallel"),
            vmem_limit_bytes=vmem_limit),
        cost_estimate=pl.CostEstimate(flops=flops, transcendentals=0,
                                      bytes_accessed=bytes_accessed),
    )(x_tiles, w1, b1, w2, b2, w3, b3)

    return jnp.transpose(out[..., :cout], (0, 3, 1, 2))    # back to NCHW


# ------------------------- parameter construction ---------------------------

def init_params(key, inplanes, planes, base_width=64, groups=1):
    width = int(planes * (base_width / 64.0)) * groups
    out_c = planes * 4                                     # expansion = 4
    ks = jax.random.split(key, 15)
    p = {
        "w1": 0.1 * jax.random.normal(ks[0], (inplanes, width), jnp.float32),
        "w2": 0.1 * jax.random.normal(ks[1], (9, width, width), jnp.float32),
        "w3": 0.1 * jax.random.normal(ks[2], (width, out_c), jnp.float32),
    }
    for i, (tag, c) in enumerate((("1", width), ("2", width), ("3", out_c))):
        kg, kb, km, kv = ks[3 + 4 * i:7 + 4 * i]
        p["gamma" + tag] = 1.0 + 0.1 * jax.random.normal(kg, (c,), jnp.float32)
        p["beta" + tag] = 0.1 * jax.random.normal(kb, (c,), jnp.float32)
        p["mean" + tag] = 0.1 * jax.random.normal(km, (c,), jnp.float32)
        p["var" + tag] = jnp.abs(jax.random.normal(kv, (c,), jnp.float32)) + 0.5
    return p


def fold_params(p, eps=1e-5):
    """Fold inference-mode BN into conv weights (bf16-rounded) + f32 bias."""
    def fold(w, tag):
        s = p["gamma" + tag] / jnp.sqrt(p["var" + tag] + eps)
        wf = (w * s).astype(jnp.bfloat16).astype(jnp.float32)  # bf16 master copy
        bias = (p["beta" + tag] - p["mean" + tag] * s).reshape(1, -1)
        return wf, bias
    w1, b1 = fold(p["w1"], "1")
    w2, b2 = fold(p["w2"], "2")
    w3, b3 = fold(p["w3"], "3")
    return {"w1": w1, "b1": b1, "w2": w2, "b2": b2, "w3": w3, "b3": b3}


# ------------------------------- reference ----------------------------------

def reference_forward(x_nchw, fp):
    hp = jax.lax.Precision.HIGHEST
    x = jnp.transpose(x_nchw, (0, 2, 3, 1)).astype(jnp.float32)
    h1 = jnp.maximum(
        jnp.einsum('nhwc,cd->nhwd', x, fp["w1"], precision=hp) + fp["b1"], 0.0)
    wdt = fp["w2"].shape[1]
    w2 = fp["w2"].reshape(3, 3, wdt, wdt)
    h2 = jax.lax.conv_general_dilated(
        h1, w2, window_strides=(1, 1), padding=((1, 1), (1, 1)),
        dimension_numbers=('NHWC', 'HWIO', 'NHWC'), precision=hp)
    h2 = jnp.maximum(h2 + fp["b2"], 0.0)
    h3 = jnp.einsum('nhwc,cd->nhwd', h2, fp["w3"], precision=hp) + fp["b3"]
    return jnp.maximum(h3 + x, 0.0).transpose(0, 3, 1, 2)


# --------------------------------- main --------------------------------------

if __name__ == "__main__":
    key = jax.random.PRNGKey(0)
    k_x, k_p = jax.random.split(key)

    N, inplanes, H, W = 2, 16, 16, 16
    planes = 4                      # width = 4, out channels = 16 == inplanes
    x = jax.random.normal(k_x, (N, inplanes, H, W), jnp.float32)
    # Kernel operands are bf16; pre-round so the f32 reference sees the same values.
    x = x.astype(jnp.bfloat16).astype(jnp.float32)

    params = fold_params(init_params(k_p, inplanes, planes))

    fwd = jax.jit(bottleneck_forward)
    out = jax.block_until_ready(fwd(x, params))

    ref = jax.block_until_ready(reference_forward(x, params))
    assert out.shape == (N, planes * 4, H, W)
    np.testing.assert_allclose(np.asarray(out), np.asarray(ref),
                               rtol=1e-3, atol=1e-3)
    print("KERNEL_OK")
</pallas_src>

<mosaic_0001>
module attributes {stable_mosaic.version = 11 : i64} {
  func.func @_bottleneck_kernel(%arg0: i32, %arg1: i32, %arg2: memref<1x1x10x24x128xbf16, #tpu.memory_space<vmem>>, %arg3: memref<128x128xbf16, #tpu.memory_space<vmem>>, %arg4: memref<1x128xf32, #tpu.memory_space<vmem>>, %arg5: memref<1152x128xbf16, #tpu.memory_space<vmem>>, %arg6: memref<1x128xf32, #tpu.memory_space<vmem>>, %arg7: memref<128x128xbf16, #tpu.memory_space<vmem>>, %arg8: memref<1x128xf32, #tpu.memory_space<vmem>>, %arg9: memref<1x8x16x128xf32, #tpu.memory_space<vmem>>) attributes {dimension_semantics = [#tpu.dimension_semantics<parallel>, #tpu.dimension_semantics<parallel>], iteration_bounds = array<i64: 2, 2>, scalar_prefetch = 0 : i64, scratch_operands = 0 : i64, tpu.core_type = #tpu.core_type<tc>, window_params = [{transform_indices = @transform_0, window_bounds = array<i64: 1, 1, 10, 24, 128>}, {pipeline_mode = #tpu.pipeline_mode<synchronous>, transform_indices = @transform_1, window_bounds = array<i64: 128, 128>}, {pipeline_mode = #tpu.pipeline_mode<synchronous>, transform_indices = @transform_2, window_bounds = array<i64: 1, 128>}, {pipeline_mode = #tpu.pipeline_mode<synchronous>, transform_indices = @transform_3, window_bounds = array<i64: 1152, 128>}, {pipeline_mode = #tpu.pipeline_mode<synchronous>, transform_indices = @transform_4, window_bounds = array<i64: 1, 128>}, {pipeline_mode = #tpu.pipeline_mode<synchronous>, transform_indices = @transform_5, window_bounds = array<i64: 128, 128>}, {pipeline_mode = #tpu.pipeline_mode<synchronous>, transform_indices = @transform_6, window_bounds = array<i64: 1, 128>}, {transform_indices = @transform_7, window_bounds = array<i64: 1, 8, 16, 128>}]} {
    %c0 = arith.constant 0 : index
    %c0_0 = arith.constant 0 : index
    %c0_1 = arith.constant 0 : index
    %c0_2 = arith.constant 0 : index
    %c0_3 = arith.constant 0 : index
    %0 = vector.load %arg2[%c0, %c0_0, %c0_1, %c0_2, %c0_3] : memref<1x1x10x24x128xbf16, #tpu.memory_space<vmem>>, vector<1x1x10x24x128xbf16>
    %1 = vector.shape_cast %0 : vector<1x1x10x24x128xbf16> to vector<10x24x128xbf16>
    %2 = vector.shape_cast %1 : vector<10x24x128xbf16> to vector<240x128xbf16>
    %c0_4 = arith.constant 0 : index
    %c0_5 = arith.constant 0 : index
    %3 = vector.load %arg3[%c0_4, %c0_5] : memref<128x128xbf16, #tpu.memory_space<vmem>>, vector<128x128xbf16>
    %cst = arith.constant dense<0.000000e+00> : vector<240x128xf32>
    %4 = tpu.matmul %2, %3, %cst {dimension_numbers = #tpu.dot_dimension_numbers<[1], [0], [0], [1], [0, 0, 1, 1], [], []>} : vector<240x128xbf16>, vector<128x128xbf16>, vector<240x128xf32> -> vector<240x128xf32>
    %c0_6 = arith.constant 0 : index
    %c0_7 = arith.constant 0 : index
    %5 = vector.load %arg4[%c0_6, %c0_7] : memref<1x128xf32, #tpu.memory_space<vmem>>, vector<1x128xf32>
    %6 = vector.broadcast %5 : vector<1x128xf32> to vector<240x128xf32>
    %7 = arith.addf %4, %6 : vector<240x128xf32>
    %cst_8 = arith.constant 0.000000e+00 : f32
    %8 = vector.broadcast %cst_8 : f32 to vector<240x128xf32>
    %9 = arith.maximumf %7, %8 : vector<240x128xf32>
    %10 = vector.shape_cast %9 : vector<240x128xf32> to vector<10x24x128xf32>
    %11 = tpu.iota {dimensions = array<i32: 0>} : vector<10x24x128xi32>
    %12 = tpu.iota {dimensions = array<i32: 1>} : vector<10x24x128xi32>
    %c8_i32 = arith.constant 8 : i32
    %13 = arith.muli %arg1, %c8_i32 : i32
    %14 = vector.broadcast %13 : i32 to vector<10x24x128xi32>
    %15 = arith.addi %11, %14 : vector<10x24x128xi32>
    %c1_i32 = arith.constant 1 : i32
    %16 = vector.broadcast %c1_i32 : i32 to vector<10x24x128xi32>
    %17 = arith.cmpi sge, %12, %16 : vector<10x24x128xi32>
    %c16_i32 = arith.constant 16 : i32
    %18 = vector.broadcast %c16_i32 : i32 to vector<10x24x128xi32>
    %19 = arith.cmpi sle, %12, %18 : vector<10x24x128xi32>
    %20 = arith.andi %17, %19 : vector<10x24x128xi1>
    %c1_i32_9 = arith.constant 1 : i32
    %21 = vector.broadcast %c1_i32_9 : i32 to vector<10x24x128xi32>
    %22 = arith.cmpi sge, %15, %21 : vector<10x24x128xi32>
    %23 = arith.andi %20, %22 : vector<10x24x128xi1>
    %c16_i32_10 = arith.constant 16 : i32
    %24 = vector.broadcast %c16_i32_10 : i32 to vector<10x24x128xi32>
    %25 = arith.cmpi sle, %15, %24 : vector<10x24x128xi32>
    %26 = arith.andi %23, %25 : vector<10x24x128xi1>
    %cst_11 = arith.constant 0.000000e+00 : f32
    %27 = vector.broadcast %cst_11 : f32 to vector<10x24x128xf32>
    %28 = arith.select %26, %10, %27 : vector<10x24x128xi1>, vector<10x24x128xf32>
    %29 = arith.truncf %28 : vector<10x24x128xf32> to vector<10x24x128xbf16>
    %30 = vector.extract_strided_slice %29 {offsets = [0, 0, 0], sizes = [8, 16, 128], strides = [1, 1, 1]} : vector<10x24x128xbf16> to vector<8x16x128xbf16>
    %31 = vector.extract_strided_slice %29 {offsets = [0, 1, 0], sizes = [8, 16, 128], strides = [1, 1, 1]} : vector<10x24x128xbf16> to vector<8x16x128xbf16>
    %32 = vector.extract_strided_slice %29 {offsets = [0, 2, 0], sizes = [8, 16, 128], strides = [1, 1, 1]} : vector<10x24x128xbf16> to vector<8x16x128xbf16>
    %33 = vector.extract_strided_slice %29 {offsets = [1, 0, 0], sizes = [8, 16, 128], strides = [1, 1, 1]} : vector<10x24x128xbf16> to vector<8x16x128xbf16>
    %34 = vector.extract_strided_slice %29 {offsets = [1, 1, 0], sizes = [8, 16, 128], strides = [1, 1, 1]} : vector<10x24x128xbf16> to vector<8x16x128xbf16>
    %35 = vector.extract_strided_slice %29 {offsets = [1, 2, 0], sizes = [8, 16, 128], strides = [1, 1, 1]} : vector<10x24x128xbf16> to vector<8x16x128xbf16>
    %36 = vector.extract_strided_slice %29 {offsets = [2, 0, 0], sizes = [8, 16, 128], strides = [1, 1, 1]} : vector<10x24x128xbf16> to vector<8x16x128xbf16>
    %37 = vector.extract_strided_slice %29 {offsets = [2, 1, 0], sizes = [8, 16, 128], strides = [1, 1, 1]} : vector<10x24x128xbf16> to vector<8x16x128xbf16>
    %38 = vector.extract_strided_slice %29 {offsets = [2, 2, 0], sizes = [8, 16, 128], strides = [1, 1, 1]} : vector<10x24x128xbf16> to vector<8x16x128xbf16>
    %39 = tpu.concatenate %30, %31, %32, %33, %34, %35, %36, %37, %38 in 2 : vector<8x16x128xbf16>, vector<8x16x128xbf16>, vector<8x16x128xbf16>, vector<8x16x128xbf16>, vector<8x16x128xbf16>, vector<8x16x128xbf16>, vector<8x16x128xbf16>, vector<8x16x128xbf16>, vector<8x16x128xbf16> -> vector<8x16x1152xbf16>
    %40 = vector.shape_cast %39 : vector<8x16x1152xbf16> to vector<128x1152xbf16>
    %c0_12 = arith.constant 0 : index
    %c0_13 = arith.constant 0 : index
    %41 = vector.load %arg5[%c0_12, %c0_13] : memref<1152x128xbf16, #tpu.memory_space<vmem>>, vector<1152x128xbf16>
    %cst_14 = arith.constant dense<0.000000e+00> : vector<128x128xf32>
    %42 = tpu.matmul %40, %41, %cst_14 {dimension_numbers = #tpu.dot_dimension_numbers<[1], [0], [0], [1], [0, 0, 1, 1], [], []>} : vector<128x1152xbf16>, vector<1152x128xbf16>, vector<128x128xf32> -> vector<128x128xf32>
    %c0_15 = arith.constant 0 : index
    %c0_16 = arith.constant 0 : index
    %43 = vector.load %arg6[%c0_15, %c0_16] : memref<1x128xf32, #tpu.memory_space<vmem>>, vector<1x128xf32>
    %44 = vector.broadcast %43 : vector<1x128xf32> to vector<128x128xf32>
    %45 = arith.addf %42, %44 : vector<128x128xf32>
    %cst_17 = arith.constant 0.000000e+00 : f32
    %46 = vector.broadcast %cst_17 : f32 to vector<128x128xf32>
    %47 = arith.maximumf %45, %46 : vector<128x128xf32>
    %48 = arith.truncf %47 : vector<128x128xf32> to vector<128x128xbf16>
    %49 = vector.extract_strided_slice %1 {offsets = [1, 1, 0], sizes = [8, 16, 128], strides = [1, 1, 1]} : vector<10x24x128xbf16> to vector<8x16x128xbf16>
    %50 = vector.shape_cast %49 : vector<8x16x128xbf16> to vector<128x128xbf16>
    %51 = arith.extf %50 : vector<128x128xbf16> to vector<128x128xf32>
    %c0_18 = arith.constant 0 : index
    %c0_19 = arith.constant 0 : index
    %52 = vector.load %arg7[%c0_18, %c0_19] : memref<128x128xbf16, #tpu.memory_space<vmem>>, vector<128x128xbf16>
    %cst_20 = arith.constant dense<0.000000e+00> : vector<128x128xf32>
    %53 = tpu.matmul %48, %52, %cst_20 {dimension_numbers = #tpu.dot_dimension_numbers<[1], [0], [0], [1], [0, 0, 1, 1], [], []>} : vector<128x128xbf16>, vector<128x128xbf16>, vector<128x128xf32> -> vector<128x128xf32>
    %c0_21 = arith.constant 0 : index
    %c0_22 = arith.constant 0 : index
    %54 = vector.load %arg8[%c0_21, %c0_22] : memref<1x128xf32, #tpu.memory_space<vmem>>, vector<1x128xf32>
    %55 = vector.broadcast %54 : vector<1x128xf32> to vector<128x128xf32>
    %56 = arith.addf %53, %55 : vector<128x128xf32>
    %57 = arith.addf %56, %51 : vector<128x128xf32>
    %cst_23 = arith.constant 0.000000e+00 : f32
    %58 = vector.broadcast %cst_23 : f32 to vector<128x128xf32>
    %59 = arith.maximumf %57, %58 : vector<128x128xf32>
    %60 = vector.shape_cast %59 : vector<128x128xf32> to vector<1x8x16x128xf32>
    %c0_24 = arith.constant 0 : index
    %c0_25 = arith.constant 0 : index
    %c0_26 = arith.constant 0 : index
    %c0_27 = arith.constant 0 : index
    %61 = vector.load %arg9[%c0_24, %c0_25, %c0_26, %c0_27] : memref<1x8x16x128xf32, #tpu.memory_space<vmem>>, vector<1x8x16x128xf32>
    tpu.vector_store %arg9[%c0_24, %c0_25, %c0_26, %c0_27], %60 {strides = array<i32>} : memref<1x8x16x128xf32, #tpu.memory_space<vmem>>, vector<1x8x16x128xf32>,
    return
  }
  func.func @transform_0(%arg0: i32, %arg1: i32) -> (i32, i32, i32, i32, i32) {
    %c0_i32 = arith.constant 0 : i32
    %c0_i32_0 = arith.constant 0 : i32
    %c0_i32_1 = arith.constant 0 : i32
    %c0_i32_2 = arith.constant 0 : i32
    return %arg0, %arg1, %c0_i32, %c0_i32_0, %c0_i32_1 : i32, i32, i32, i32, i32
  }
  func.func @transform_1(%arg0: i32, %arg1: i32) -> (i32, i32) {
    %c0_i32 = arith.constant 0 : i32
    %c0_i32_0 = arith.constant 0 : i32
    %c0_i32_1 = arith.constant 0 : i32
    return %c0_i32, %c0_i32_0 : i32, i32
  }
  func.func @transform_2(%arg0: i32, %arg1: i32) -> (i32, i32) {
    %c0_i32 = arith.constant 0 : i32
    %c0_i32_0 = arith.constant 0 : i32
    %c0_i32_1 = arith.constant 0 : i32
    return %c0_i32, %c0_i32_0 : i32, i32
  }
  func.func @transform_3(%arg0: i32, %arg1: i32) -> (i32, i32) {
    %c0_i32 = arith.constant 0 : i32
    %c0_i32_0 = arith.constant 0 : i32
    %c0_i32_1 = arith.constant 0 : i32
    return %c0_i32, %c0_i32_0 : i32, i32
  }
  func.func @transform_4(%arg0: i32, %arg1: i32) -> (i32, i32) {
    %c0_i32 = arith.constant 0 : i32
    %c0_i32_0 = arith.constant 0 : i32
    %c0_i32_1 = arith.constant 0 : i32
    return %c0_i32, %c0_i32_0 : i32, i32
  }
  func.func @transform_5(%arg0: i32, %arg1: i32) -> (i32, i32) {
    %c0_i32 = arith.constant 0 : i32
    %c0_i32_0 = arith.constant 0 : i32
    %c0_i32_1 = arith.constant 0 : i32
    return %c0_i32, %c0_i32_0 : i32, i32
  }
  func.func @transform_6(%arg0: i32, %arg1: i32) -> (i32, i32) {
    %c0_i32 = arith.constant 0 : i32
    %c0_i32_0 = arith.constant 0 : i32
    %c0_i32_1 = arith.constant 0 : i32
    return %c0_i32, %c0_i32_0 : i32, i32
  }
  func.func @transform_7(%arg0: i32, %arg1: i32) -> (i32, i32, i32, i32) {
    %c0_i32 = arith.constant 0 : i32
    %c0_i32_0 = arith.constant 0 : i32
    %c0_i32_1 = arith.constant 0 : i32
    return %arg0, %arg1, %c0_i32, %c0_i32_0 : i32, i32, i32, i32
  }
}

</mosaic_0001>

<bundles_post_ra>
// kernel: bottleneck_forward.1
= control target key start
LH: loop header
LB: loop body
LE: loop exit
PB: predicated region body
PF: predicated region fallthrough
CT: control target
= control target key end

     0   :  { %s3568_s24 = smov 0   ;;  %s3570_s25 = smov 0   ;;  %s5132_s0 = inlined_call_operand.vmem [shape: bf16[2,2,10,24,128], index: 0, kind: input, shape index: {}]   ;;  %s5133_s1 = inlined_call_operand.vmem [shape: bf16[128,128], index: 1, kind: input, shape index: {}]   ;;  %s5134_s2 = inlined_call_operand.vmem [shape: f32[1,128], index: 2, kind: input, shape index: {}]   ;;  %s5135_s3 = inlined_call_operand.vmem [shape: bf16[1152,128], index: 3, kind: input, shape index: {}]   ;;  %s5136_s4 = inlined_call_operand.vmem [shape: f32[1,128], index: 4, kind: input, shape index: {}]   ;;  %s5137_s5 = inlined_call_operand.vmem [shape: bf16[128,128], index: 5, kind: input, shape index: {}]   ;;  %s5138_s6 = inlined_call_operand.vmem [shape: f32[1,128], index: 6, kind: input, shape index: {}]   ;;  %s5139_s7 = inlined_call_operand.vmem [shape: f32[2,16,16,128], index: 7, kind: output, shape index: {}]  }
   0x1   :  { %s3572_s26 = smov 0   ;;  %s3574_s27 = smov 0  }
   0x2   :  { %s3576_s28 = smov 0  }
   0x3 LB: > { %s26_s29 = sadd.s32 1, %s3516_s26  ;;  %s29_s30 = sadd.s32 1, %s3520_s27  ;;  %s3524_s28 = sphi %s3576_s28, %s17_s28   ;;  %s3520_s27 = sphi %s3574_s27, %s5256_s27   ;;  %s3516_s26 = sphi %s3572_s26, %s5255_s26   ;;  %s3512_s25 = sphi %s3570_s25, %s5254_s25   ;;  %s3508_s24 = sphi %s3568_s24, %s5253_s24  }
   0x4   : > { %p27_p0 = scmp.ge.s32.totalorder %s26_s29, 2  ;;  %p2677_p1 = scmp.ge.s32.totalorder %s3524_s28, 1 }
   0x5   : > { %p257_p2 = scmp.lt.s32.totalorder %s3524_s28, 5 }
   0x6   : > { %s5258_s29 = smov (%p27_p0, %s26_s29), 0  ;;  %s5260_s30 = smov (!%p27_p0, %s29_s30), %s3520_s27 }
   0x7   : > { %p258_p3 = pnand %p2677_p1, %p257_p2  ;;  %p31_p4 = scmp.ge.s32.totalorder %s5260_s30, 2 }
   0x9   : > { %s5262_s30 = smov (%p31_p4, %s5260_s30), 0  ;;  %261 = sbr.rel (%p258_p3) target bundleno = 888 (0x378), region = 48 }
   0xe   : > { %v3359_v0 = vld [vmem:[%s5133_s1 + $0x38] sm:$0xff]   ;;  %v3526_v1 = vmov 0.0   ;;  %v3360_v2 = vld [vmem:[%s5133_s1 + $0x30] sm:$0xff]   ;;  %vm3527_vm0 = vmmov 0   ;;  %p298_p5 = scmp.lt.s32.totalorder %s3512_s25, 1  ;;  %p300_p6 = scmp.lt.s32.totalorder %s3508_s24, 1 }
   0xf   : > { %3175 = vmatprep.subr.bf16.mxu0 %v3526_v1  ;;  %3191 = vmatprep.mubr.msk.bf16.mxu0 %vm3527_vm0, %v3526_v1  ;;  %v3361_v3 = vld [vmem:[%s5133_s1 + $0x28] sm:$0xff]   ;;  %v3362_v4 = vld [vmem:[%s5133_s1 + $0x20] sm:$0xff]   ;;  %v3363_v5 = vld [vmem:[%s5133_s1 + $0x18] sm:$0xff]   ;;  %s3806_s9 = sshll.u32 %s3508_s24, 3  ;;  %vm5142_vm13 = vcmask 1046528  }
  0x10   : > { %3176 = vmatpush3.bf16.msra.mxu0 %v3359_v0  ;;  %s5264_s25 = smov (!%p298_p5, %s3512_s25), 1  ;;  %v3364_v6 = vld [vmem:[%s5133_s1 + $0x10] sm:$0xff]   ;;  %v3382_v7 = vld [vmem:[%s5135_s3 + $0x78] sm:$0xff]   ;;  %v3365_v9 = vld [vmem:[%s5133_s1 + $0x8] sm:$0xff]   ;;  %p310_p7 = scmp.lt.s32.totalorder %s3806_s9, 15 }
  0x11   : > { %3177 = vmatprep.subr.bf16.mxu0 %v3526_v1  ;;  %s301_s12 = scalar_select %p300_p6, %s3508_s24, 1  ;;  %2887 = vmatprep.subr.bf16.mxu1 %v3382_v7  ;;  %v3383_v8 = vld [vmem:[%s5135_s3 + $0x38] sm:$0xff]   ;;  %v3384_v10 = vld [vmem:[%s5135_s3 + $0x70] sm:$0xff]   ;;  %v3366_v12 = vld [vmem:[%s5133_s1] sm:$0xff]  }
  0x12   : > { %s3316_s15 = smul.u32 60, %s5264_s25  ;;  %2888 = vmatpush3.bf16.msra.mxu1 %v3383_v8  ;;  %v3385_v11 = vld [vmem:[%s5135_s3 + $0x30] sm:$0xff]   ;;  %v3386_v13 = vld [vmem:[%s5135_s3 + $0x68] sm:$0xff]   ;;  %v3388_v40 = vld [vmem:[%s5135_s3 + $0x178] sm:$0xff]  }
  0x13   : > { %s3315_s16 = smul.u32 30, %s301_s12  ;;  %2889 = vmatprep.subr.bf16.mxu1 %v3384_v10  ;;  %v3387_v14 = vld [vmem:[%s5135_s3 + $0x28] sm:$0xff]   ;;  %v3389_v41 = vld [vmem:[%s5135_s3 + $0x60] sm:$0xff]   ;;  %v3390_v42 = vld [vmem:[%s5135_s3 + $0x138] sm:$0xff]  }
  0x14   : > { %3178 = vmatpush3.bf16.msra.mxu0 %v3360_v2  ;;  %v3391_v45 = vld [vmem:[%s5135_s3 + $0x20] sm:$0xff]   ;;  %v3392_v46 = vld [vmem:[%s5135_s3 + $0x170] sm:$0xff]   ;;  %v3393_v48 = vld [vmem:[%s5135_s3 + $0x58] sm:$0xff]  }
  0x15   : > { %3179 = vmatprep.subr.bf16.mxu0 %v3526_v1  ;;  %s304_s17 = sadd.s32 %s3316_s15, %s3315_s16  ;;  %v3394_v49 = vld [vmem:[%s5135_s3 + $0x130] sm:$0xff]   ;;  %v3395_v50 = vld [vmem:[%s5135_s3 + $0x18] sm:$0xff]   ;;  %v3396_v51 = vld [vmem:[%s5135_s3 + $0x168] sm:$0xff]   ;;  %s2681_s15 = sshll.u32 %s5264_s25, 5 }
  0x16   : > { %s2678_s20 = sshll.u32 %s304_s17, 2  ;;  %2890 = vmatpush3.bf16.msra.mxu1 %v3385_v11  ;;  %v3397_v52 = vld [vmem:[%s5135_s3 + $0x50] sm:$0xff]   ;;  %v3398_v53 = vld [vmem:[%s5135_s3 + $0x128] sm:$0xff]   ;;  %v3400_v57 = vld [vmem:[%s5135_s3 + $0x160] sm:$0xff]  }
  0x17   : > { %s3626_s23 = scalar_lea.vmem %s5132_s0, %s2678_s20  ;;  %2891 = vmatprep.subr.bf16.mxu1 %v3386_v13  ;;  %v3399_v56 = vld [vmem:[%s5135_s3 + $0x10] sm:$0xff]   ;;  %v3401_v59 = vld [vmem:[%s5135_s3 + $0x48] sm:$0xff]   ;;  %v3402_v60 = vld [vmem:[%s5135_s3 + $0x120] sm:$0xff]  }
  0x18   : > { %3180 = vmatpush3.bf16.msra.mxu0 %v3361_v3  ;;  %v3367_v15 = vld [vmem:[%s3626_s23] sm:$0xff]   ;;  %v321_v16 = vld [vmem:[%s3626_s23 + $0x8] sm:$0xf]  ;;  %v322_v17 = vld [vmem:[%s3626_s23 + $0xc] sm:$0xf] }
  0x19   : > { %3181 = vmatprep.subr.bf16.mxu0 %v3526_v1  ;;  %v2685_v18 = vcombine.low %v321_v16, %v322_v17  ;;  %v323_v19 = vld [vmem:[%s3626_s23 + $0x10] sm:$0xf]  ;;  %v324_v20 = vld [vmem:[%s3626_s23 + $0x14] sm:$0xf]  ;;  %v325_v22 = vld [vmem:[%s3626_s23 + $0x18] sm:$0xf] }
  0x1a   : > { %2892 = vmatpush3.bf16.msra.mxu1 %v3387_v14  ;;  %v2686_v21 = vcombine.low %v323_v19, %v324_v20  ;;  %v326_v23 = vld [vmem:[%s3626_s23 + $0x1c] sm:$0xf]  ;;  %v327_v25 = vld [vmem:[%s3626_s23 + $0x20] sm:$0xf]  ;;  %v328_v26 = vld [vmem:[%s3626_s23 + $0x24] sm:$0xf] }
  0x1b   : > { %v2687_v24 = vcombine.low %v325_v22, %v326_v23  ;;  %v2688_v27 = vcombine.low %v327_v25, %v328_v26  ;;  %v329_v28 = vld [vmem:[%s3626_s23 + $0x28] sm:$0xf]  ;;  %v330_v29 = vld [vmem:[%s3626_s23 + $0x2c] sm:$0xf]  ;;  %v331_v31 = vld [vmem:[%s3626_s23 + $0x30] sm:$0xf]  ;;  %2893 = vmatprep.subr.bf16.mxu1 %v3389_v41 }
  0x1c   : > { %3182 = vmatpush3.bf16.msra.mxu0 %v3362_v4  ;;  %v2689_v30 = vcombine.low %v329_v28, %v330_v29  ;;  %v332_v32 = vld [vmem:[%s3626_s23 + $0x34] sm:$0xf]  ;;  %v333_v34 = vld [vmem:[%s3626_s23 + $0x38] sm:$0xf]  ;;  %v334_v35 = vld [vmem:[%s3626_s23 + $0x3c] sm:$0xf] }
  0x1d   : > { %3183 = vmatprep.subr.bf16.mxu0 %v3526_v1  ;;  %v2690_v33 = vcombine.low %v331_v31, %v332_v32  ;;  %v2691_v36 = vcombine.low %v333_v34, %v334_v35  ;;  %v335_v37 = vld [vmem:[%s3626_s23 + $0x40] sm:$0xf]  ;;  %v336_v38 = vld [vmem:[%s3626_s23 + $0x44] sm:$0xf]  ;;  %v337_v43 = vld [vmem:[%s3626_s23 + $0x48] sm:$0xf] }
  0x1e   : > { %v2692_v39 = vcombine.low %v335_v37, %v336_v38  ;;  %v338_v44 = vld [vmem:[%s3626_s23 + $0x4c] sm:$0xf]  ;;  %2894 = vmatpush3.bf16.msra.mxu1 %v3391_v45  ;;  %v339_v54 = vld [vmem:[%s3626_s23 + $0x50] sm:$0xf]  ;;  %v340_v55 = vld [vmem:[%s3626_s23 + $0x54] sm:$0xf] }
  0x1f   : > { %v2693_v47 = vcombine.low %v337_v43, %v338_v44  ;;  %2895 = vmatprep.subr.bf16.mxu1 %v3393_v48  ;;  %v2694_v58 = vcombine.low %v339_v54, %v340_v55  ;;  %v3403_v61 = vld [vmem:[%s5135_s3 + $0x8] sm:$0xff]   ;;  %v3404_v62 = vld [vmem:[%s5135_s3 + $0x158] sm:$0xff]   ;;  %v3405_v63 = vld [vmem:[%s5135_s3 + $0x40] sm:$0xff]  }
  0x20   : > { %3184 = vmatpush3.bf16.msra.mxu0 %v3363_v5  ;;  %v3406_v0 = vld [vmem:[%s5135_s3 + $0x118] sm:$0xff]   ;;  %v3407_v4 = vld [vmem:[%s5135_s3] sm:$0xff]   ;;  %v3408_v5 = vld [vmem:[%s5135_s3 + $0x150] sm:$0xff]  }
  0x21   : > { %3185 = vmatprep.subr.bf16.mxu0 %v3526_v1  ;;  %v341_v2 = vld [vmem:[%s3626_s23 + $0x58] sm:$0xf]  ;;  %v342_v3 = vld [vmem:[%s3626_s23 + $0x5c] sm:$0xf]  ;;  %v3409_v7 = vld [vmem:[%s5135_s3 + $0x110] sm:$0xff]  }
  0x22   : > { %2896 = vmatpush3.bf16.msra.mxu1 %v3395_v50  ;;  %v3410_v8 = vld [vmem:[%s5135_s3 + $0x148] sm:$0xff]   ;;  %v343_v10 = vld [vmem:[%s3626_s23 + $0x60] sm:$0xf]  ;;  %v344_v11 = vld [vmem:[%s3626_s23 + $0x64] sm:$0xf] }
  0x23   : > { %2897 = vmatprep.subr.bf16.mxu1 %v3397_v52  ;;  %v2696_v13 = vcombine.low %v343_v10, %v344_v11  ;;  %v3413_v14 = vld [vmem:[%s5135_s3 + $0x100] sm:$0xff]   ;;  %v346_v16 = vld [vmem:[%s3626_s23 + $0x6c] sm:$0xf]  ;;  %v3414_v19 = vld [vmem:[%s5135_s3 + $0xf8] sm:$0xff]  }
  0x24   : > { %3186 = vmatpush3.bf16.msra.mxu0 %v3364_v6  ;;  %v2695_v6 = vcombine.low %v341_v2, %v342_v3  ;;  %v3802_v20 = vld [vmem:[%s5135_s3 + $0x238] sm:$0xff]   ;;  %v3816_v23 = vld [vmem:[%s5134_s2] ss:$0 sm:$0xff] }
  0x25   : > { %3187 = vmatprep.subr.bf16.mxu0 %v3526_v1  ;;  %v3415_v2 = vld [vmem:[%s5135_s3 + $0xb8] sm:$0xff]  }
  0x26   : > { %2898 = vmatpush3.bf16.msra.mxu1 %v3399_v56 }
  0x27   : > { %2899 = vmatprep.subr.bf16.mxu1 %v3401_v59 }
  0x28   : > { %3188 = vmatpush3.bf16.msra.mxu0 %v3365_v9  ;;  %v3411_v9 = vld [vmem:[%s5135_s3 + $0x108] sm:$0xff]  }
  0x29   : > { %3189 = vmatprep.subr.bf16.mxu0 %v3526_v1 }
  0x2a   : > { %2900 = vmatpush3.bf16.msra.mxu1 %v3403_v61 }
  0x2b   : > { %2901 = vmatprep.subr.bf16.mxu1 %v3405_v63 }
  0x2c   : > { %3190 = vmatpush3.bf16.msra.mxu0 %v3366_v12  ;;  %v3412_v12 = vld [vmem:[%s5135_s3 + $0x140] sm:$0xff]  }
  0x2d   : > { %3015 = vmatprep.subr.bf16.mxu0 %v3388_v40 }
  0x2e   : > { %2902 = vmatpush3.bf16.msra.mxu1 %v3407_v4 }
  0x2f   : > { %3192 = vmatmul.mubr.bf16.vlgmr.msra.gmra.mxu0 %v3367_v15  ;;  %v345_v15 = vld [vmem:[%s3626_s23 + $0x68] sm:$0xf]  ;;  %2951 = vmatprep.subr.bf16.mxu1 %v3414_v19 }
  0x30   : > { %3195 = vmatprep.mubr.msk.bf16.mxu0 %vm3527_vm0, %v3526_v1  ;;  %3016 = vmatpush3.bf16.msra.mxu0 %v3390_v42  ;;  %v2697_v17 = vcombine.low %v345_v15, %v346_v16  ;;  %v3418_v16 = vld [vmem:[%s5135_s3 + $0xe8] sm:$0xff]  }
  0x31   : > { %3017 = vmatprep.subr.bf16.mxu0 %v3392_v46 }
  0x34   : > { %3018 = vmatpush3.bf16.msra.mxu0 %v3394_v49 }
  0x35   : > { %3019 = vmatprep.subr.bf16.mxu0 %v3396_v51 }
  0x37   : > { %3196 = vmatmul.mubr.bf16.gmra.mxu0 %v2685_v18  ;;  %v3381_v18 = vld [vmem:[%s3626_s23 + $0x70] sm:$0xff]  }
  0x38   : > { %3199 = vmatprep.mubr.msk.bf16.mxu0 %vm3527_vm0, %v3526_v1  ;;  %3020 = vmatpush3.bf16.msra.mxu0 %v3398_v53 }
  0x39   : > { %3021 = vmatprep.subr.bf16.mxu0 %v3400_v57 }
  0x3c   : > { %3022 = vmatpush3.bf16.msra.mxu0 %v3402_v60 }
  0x3d   : > { %3023 = vmatprep.subr.bf16.mxu0 %v3404_v62 }
  0x3f   : > { %3200 = vmatmul.mubr.bf16.gmra.mxu0 %v2686_v21  ;;  %v693_v21 = vlaneseq }
  0x40   : > { %3203 = vmatprep.mubr.msk.bf16.mxu0 %vm3527_vm0, %v3526_v1  ;;  %3024 = vmatpush3.bf16.msra.mxu0 %v3406_v0 }
  0x41   : > { %3025 = vmatprep.subr.bf16.mxu0 %v3408_v5  ;;  %v3808_v22 = vshrl.u32 %v693_v21, 7 }
  0x43   : > { %vm5143_vm1 = vcmp.ge.s32.totalorder %v3808_v22, 1  ;;  %v3821_v25 = vadd.s32 16, %v3808_v22 }
  0x44   : > { %3026 = vmatpush3.bf16.msra.mxu0 %v3409_v7 }
  0x45   : > { %3027 = vmatprep.subr.bf16.mxu0 %v3410_v8  ;;  %vm5145_vm5 = vcmp.le.s32.totalorder %v3821_v25, 16 }
  0x47   : > { %3204 = vmatmul.mubr.bf16.gmra.mxu0 %v2687_v24 }
  0x48   : > { %3207 = vmatprep.mubr.msk.bf16.mxu0 %vm3527_vm0, %v3526_v1  ;;  %3028 = vmatpush3.bf16.msra.mxu0 %v3411_v9 }
  0x49   : > { %3029 = vmatprep.subr.bf16.mxu0 %v3412_v12 }
  0x4c   : > { %3030 = vmatpush3.bf16.msra.mxu0 %v3413_v14 }
  0x4d   : > { %3251 = vmatprep.subr.bf16.mxu0 %v3802_v20 }
  0x4f   : > { %3208 = vmatmul.mubr.bf16.gmra.mxu0 %v2688_v27 }
  0x50   : > { %3211 = vmatprep.mubr.msk.bf16.mxu0 %vm3527_vm0, %v3526_v1 }
  0x57   : > { %3212 = vmatmul.mubr.bf16.gmra.mxu0 %v2689_v30 }
  0x58   : > { %3215 = vmatprep.mubr.msk.bf16.mxu0 %vm3527_vm0, %v3526_v1 }
  0x5f   : > { %3216 = vmatmul.mubr.bf16.gmra.mxu0 %v2690_v33 }
  0x60   : > { %3219 = vmatprep.mubr.msk.bf16.mxu0 %vm3527_vm0, %v3526_v1 }
  0x67   : > { %3220 = vmatmul.mubr.bf16.gmra.mxu0 %v2691_v36 }
  0x68   : > { %3223 = vmatprep.mubr.msk.bf16.mxu0 %vm3527_vm0, %v3526_v1 }
  0x6f   : > { %3224 = vmatmul.mubr.bf16.gmra.mxu0 %v2692_v39 }
  0x70   : > { %3227 = vmatprep.mubr.msk.bf16.mxu0 %vm3527_vm0, %v3526_v1 }
  0x77   : > { %3228 = vmatmul.mubr.bf16.gmra.mxu0 %v2693_v47 }
  0x78   : > { %3231 = vmatprep.mubr.msk.bf16.mxu0 %vm3527_vm0, %v3526_v1 }
  0x7f   : > { %3232 = vmatmul.mubr.bf16.gmra.mxu0 %v2694_v58 }
  0x80   : > { %3235 = vmatprep.mubr.msk.bf16.mxu0 %vm3527_vm0, %v3526_v1 }
  0x87   : > { %3236 = vmatmul.mubr.bf16.gmra.mxu0 %v2695_v6  ;;  %v3416_v6 = vld [vmem:[%s5135_s3 + $0xf0] sm:$0xff]  }
  0x88   : > { %3239 = vmatprep.mubr.msk.bf16.mxu0 %vm3527_vm0, %v3526_v1 }
  0x8f   : > { %3240 = vmatmul.mubr.bf16.gmra.mxu0 %v2696_v13  ;;  %v3417_v13 = vld [vmem:[%s5135_s3 + $0xb0] sm:$0xff]  }
  0x90   : > { %3243 = vmatprep.mubr.msk.bf16.mxu0 %vm3527_vm0, %v3526_v1 }
  0x97   : > { %3244 = vmatmul.mubr.bf16.gmra.mxu0 %v2697_v17 }
  0x98   : > { %3247 = vmatprep.mubr.msk.bf16.mxu0 %vm3527_vm0, %v3526_v1  ;;  %v3811_v1 = vstv %s3806_s9  ;;  %vm5141_vm0 = vsmask.f32 7424  ;;  %s5266_s9 = smov (!%p310_p7, %s3806_s9), 15 }
  0x99   : > { %vm717_vm2 = vcmp.ge.s32.totalorder %v3811_v1, 1  ;;  %vm757_vm4 = vcmp.le.s32.totalorder %v3811_v1, 16  ;;  %v699_v34 = vadd.s32 1, %v3811_v1  ;;  %v3883_v62 = vadd.s32 2, %v3811_v1 }
  0x9a   : > { %vm727_vm3 = vmand %vm5143_vm1, %vm717_vm2 }
  0x9b   : > { %vm3832_vm6 = vmand %vm727_vm3, %vm757_vm4  ;;  %vm718_vm10 = vcmp.ge.s32.totalorder %v699_v34, 1  ;;  %vm758_vm12 = vcmp.le.s32.totalorder %v699_v34, 16 }
  0x9c   : > { %vm3841_vm7 = vmand %vm717_vm2, %vm757_vm4 }
  0x9d   : > { %vm729_vm8 = vmand %vm5145_vm5, %vm717_vm2 }
  0x9e   : > { %vm769_vm9 = vmand %vm729_vm8, %vm757_vm4  ;;  %vm719_vm8 = vcmp.ge.s32.totalorder %v3883_v62, 1 }
  0x9f   : > { %3248 = vmatmul.mubr.bf16.gmra.mxu0 %v3381_v18  ;;  %vm730_vm11 = vmand %vm5143_vm1, %vm718_vm10 }
  0xa0   : > { %vm3864_vm14 = vmand %vm730_vm11, %vm758_vm12 }
  0xa1   : > { %vm3874_vm15 = vmand %vm718_vm10, %vm758_vm12 }
  0xa2   : > { %vm2781_vm2 = vmpackc.low %vm3841_vm7, %vm3832_vm6 }
  0xa3   : > { %vm732_vm3 = vmand %vm5145_vm5, %vm718_vm10 }
  0xa4   : > { %vm772_vm4 = vmand %vm732_vm3, %vm758_vm12 }
  0xa5   : > { %vm5140_vm11 = vmpackc.low %vm3874_vm15, %vm3864_vm14 }
  0xa6   : > { %vm3967_vm12 = vmand %vm5145_vm5, %vm719_vm8 }
  0xef   : > { %v544_v24 = vpop.f32.mrf.mxu0 }
  0xf0   : > { %v545_v26 = vadd.f32 %v3816_v23, %v544_v24 }
  0xf1   : > { %v3193_v27 = vpop.f32.mrf.mxu0 }
  0xf2   : > { %v663_v29 = vmax.f32 %v545_v26, 0.0  ;;  %v3419_v26 = vld [vmem:[%s5135_s3 + $0xa8] sm:$0xff]  }
  0xf3   : > { %v547_v28 = vpop.f32.mrf.mxu0 }
  0xf4   : > { %v548_v31 = vadd.f32 %v3816_v23, %v547_v28  ;;  %v797_v37 = vsel %vm3832_vm6, %v663_v29, 0.0  ;;  %vm733_vm6 = vmand %vm5143_vm1, %vm719_vm8 }
  0xf5   : > { %v3194_v33 = vpop.f32.mrf.mxu0 }
  0xf6   : > { %v664_v35 = vmax.f32 %v548_v31, 0.0  ;;  %v3420_v33 = vld [vmem:[%s5135_s3 + $0xe0] sm:$0xff]  }
  0xf7   : > { %v552_v36 = vpop.f32.mrf.mxu0 }
  0xf8   : > { %v798_v38 = vsel %vm3841_vm7, %v664_v35, 0.0  ;;  %v553_v39 = vadd.f32 %v3816_v23, %v552_v36  ;;  %v2782_v3 = vpack.c.bf16 %v664_v35, %v663_v29  ;;  %vm759_vm7 = vcmp.le.s32.totalorder %v3883_v62, 16  ;;  %v3424_v62 = vld [vmem:[%s5135_s3 + $0xd0] sm:$0xff]  }
  0xf9   : > { %v827_v40 = vpack.c.bf16 %v798_v38, %v797_v37  ;;  %v3197_v41 = vpop.f32.mrf.mxu0  ;;  %vm3947_vm10 = vmand %vm719_vm8, %vm759_vm7 }
  0xfa   : > { %v665_v42 = vmax.f32 %v553_v39, 0.0  ;;  %v3959_v41 = vadd.s32 3, %v3811_v1 }
  0xfb   : > { %v555_v43 = vpop.f32.mrf.mxu0  ;;  %v851_v44 = vshll.u32 %v827_v40, 16  ;;  %v969_v50 = vrot.slane %v827_v40, 1  ;;  %v849_v54 = vshrl.u32 %v827_v40, 16 }
  0xfc   : > { %v799_v45 = vsel %vm769_vm9, %v665_v42, 0.0  ;;  %v3858_v46 = vadd.f32 %v3816_v23, %v555_v43  ;;  %vm3932_vm9 = vmand %vm733_vm6, %vm759_vm7  ;;  %vm720_vm3 = vcmp.ge.s32.totalorder %v3959_v41, 1  ;;  %vm760_vm8 = vcmp.le.s32.totalorder %v3959_v41, 16  ;;  %v3433_v43 = vld [vmem:[%s5135_s3 + $0x80] sm:$0xff]   ;;  %v3436_v41 = vld [vmem:[%s5135_s3 + $0x210] sm:$0xff]  }
  0xfd   : > { %v828_v47 = vpack.c.bf16 %v799_v45, %v799_v45  ;;  %v3198_v48 = vpop.f32.mrf.mxu0  ;;  %v853_v49 = vrot.slane %v851_v44, 1  ;;  %v3421_v44 = vld [vmem:[%s5135_s3 + $0xa0] sm:$0xff]   ;;  %v3428_v45 = vld [vmem:[%s5135_s3 + $0x230] sm:$0xff]  }
  0xfe   : > { %v666_v56 = vmax.f32 %v3858_v46, 0.0 }
  0xff   : > { %v970_v51 = vrot.slane %v828_v47, 1  ;;  %v560_v53 = vpop.f32.mrf.mxu0  ;;  %v856_v55 = vshll.u32 %v828_v47, 16  ;;  %v854_v60 = vor.u32 %v853_v49, %v849_v54 }
 0x100   : > { %v3870_v57 = vadd.f32 %v3816_v23, %v560_v53  ;;  %v800_v7 = vsel %vm3864_vm14, %v666_v56, 0.0 }
 0x101   : > { %v3201_v59 = vpop.f32.mrf.mxu0  ;;  %v858_v61 = vrot.slane %v856_v55, 1  ;;  %v3886_v63 = vsel %vm5142_vm13, %v969_v50, %v970_v51  ;;  %v3422_v50 = vld [vmem:[%s5135_s3 + $0xd8] sm:$0xff]  }
 0x102   : > { %v667_v0 = vmax.f32 %v3870_v57, 0.0  ;;  %v3423_v57 = vld [vmem:[%s5135_s3 + $0x98] sm:$0xff]   ;;  %v3430_v59 = vld [vmem:[%s5135_s3 + $0x228] sm:$0xff]  }
 0x103   : > { %v563_v4 = vpop.f32.mrf.mxu0  ;;  %v859_v5 = vsel %vm5141_vm0, %v854_v60, %v858_v61 }
 0x104   : > { %v801_v8 = vsel %vm3874_vm15, %v667_v0, 0.0  ;;  %v564_v9 = vadd.f32 %v3816_v23, %v563_v4  ;;  %1654 = vmatprep.mubr.bf16.mxu1 %v859_v5  ;;  %v3979_v47 = vpack.c.bf16 %v667_v0, %v666_v56  ;;  %v3425_v5 = vld [vmem:[%s5135_s3 + $0x90] sm:$0xff]  }
 0x105   : > { %v829_v10 = vpack.c.bf16 %v801_v8, %v800_v7  ;;  %v3202_v11 = vpop.f32.mrf.mxu0  ;;  %2783 = vmatmul.mubr.msk.bf16.vlgmr.msra.gmra.mxu1 %vm2781_vm2, %v2782_v3  ;;  %vm775_vm2 = vmand %vm3967_vm12, %vm759_vm7  ;;  %v3440_v8 = vld [vmem:[%s5135_s3 + $0x200] sm:$0xff]  }
 0x106   : > { %v668_v12 = vmax.f32 %v564_v9, 0.0  ;;  %2952 = vmatpush3.bf16.msra.mxu1 %v3415_v2  ;;  %vm4046_vm7 = vmand %vm720_vm3, %vm760_vm8 }
 0x107   : > { %v863_v14 = vshll.u32 %v829_v10, 16  ;;  %v568_v15 = vpop.f32.mrf.mxu0  ;;  %2953 = vmatprep.subr.bf16.mxu1 %v3416_v6  ;;  %v972_v31 = vrot.slane %v829_v10, 1  ;;  %v861_v32 = vshrl.u32 %v829_v10, 16  ;;  %vm4057_vm12 = vmpackc.low %vm3947_vm10, %vm3932_vm9 }
 0x108   : > { %v802_v17 = vsel %vm772_vm4, %v668_v12, 0.0  ;;  %v3920_v18 = vadd.f32 %v3816_v23, %v568_v15  ;;  %vm736_vm4 = vmand %vm5143_vm1, %vm720_vm3  ;;  %v3427_v12 = vld [vmem:[%s5135_s3 + $0xc8] sm:$0xff]  }
 0x109   : > { %v830_v19 = vpack.c.bf16 %v802_v17, %v802_v17  ;;  %v3205_v21 = vpop.f32.mrf.mxu0  ;;  %v865_v24 = vrot.slane %v863_v14, 1  ;;  %vm4028_vm6 = vmand %vm736_vm4, %vm760_vm8 }
 0x10a   : > { %2954 = vmatpush3.bf16.msra.mxu1 %v3417_v13  ;;  %v669_v34 = vmax.f32 %v3920_v18, 0.0  ;;  %v3432_v13 = vld [vmem:[%s5135_s3 + $0x220] sm:$0xff]  }
 0x10b   : > { %v868_v27 = vshll.u32 %v830_v19, 16  ;;  %v973_v28 = vrot.slane %v830_v19, 1  ;;  %v571_v30 = vpop.f32.mrf.mxu0  ;;  %2955 = vmatprep.subr.bf16.mxu1 %v3418_v16  ;;  %v866_v40 = vor.u32 %v865_v24, %v861_v32 }
 0x10c   : > { %v3941_v35 = vadd.f32 %v3816_v23, %v571_v30  ;;  %v803_v51 = vsel %vm3932_vm9, %v669_v34, 0.0  ;;  %v3429_v30 = vld [vmem:[%s5135_s3 + $0x88] sm:$0xff]  }
 0x10d   : > { %v870_v37 = vrot.slane %v868_v27, 1  ;;  %v3206_v38 = vpop.f32.mrf.mxu0  ;;  %v3952_v39 = vsel %vm5142_vm13, %v972_v31, %v973_v28  ;;  %v4062_v27 = vadd.s32 4, %v3811_v1  ;;  %v3434_v31 = vld [vmem:[%s5135_s3 + $0x218] sm:$0xff]  }
 0x10e   : > { %v670_v42 = vmax.f32 %v3941_v35, 0.0  ;;  %1848 = vmatprep.mubr.bf16.mxu0 %v3952_v39  ;;  %2956 = vmatpush3.bf16.msra.mxu1 %v3419_v26 }
 0x10f   : > { %v576_v48 = vpop.f32.mrf.mxu0  ;;  %v871_v49 = vsel %vm5141_vm0, %v866_v40, %v870_v37  ;;  %2957 = vmatprep.subr.bf16.mxu1 %v3420_v33  ;;  %v3431_v37 = vld [vmem:[%s5135_s3 + $0xc0] sm:$0xff]   ;;  %vm761_vm4 = vcmp.le.s32.totalorder %v4062_v27, 16 }
 0x110   : > { %v804_v46 = vsel %vm3947_vm10, %v670_v42, 0.0  ;;  %v577_v53 = vadd.f32 %v3816_v23, %v576_v48  ;;  %1662 = vmatprep.mubr.bf16.mxu1 %v871_v49  ;;  %1849 = vmatmul.mubr.bf16.vlgmr.msra.gmra.mxu0 %v871_v49  ;;  %v4084_v32 = vpack.c.bf16 %v670_v42, %v669_v34  ;;  %vm721_vm10 = vcmp.ge.s32.totalorder %v4062_v27, 1  ;;  %v3435_v48 = vld [vmem:[%s5135_s3 + $0x1f8] sm:$0xff]  }
 0x111   : > { %v831_v54 = vpack.c.bf16 %v804_v46, %v803_v51  ;;  %v3209_v55 = vpop.f32.mrf.mxu0  ;;  %2786 = vmatmul.mubr.msk.bf16.gmra.mxu1 %vm5140_vm11, %v3979_v47  ;;  %3252 = vmatpush3.bf16.msra.mxu0 %v3802_v20 }
 0x112   : > { %v671_v56 = vmax.f32 %v577_v53, 0.0  ;;  %2958 = vmatpush3.bf16.msra.mxu1 %v3421_v44  ;;  %3253 = vmatprep.subr.bf16.mxu0 %v3428_v45 }
 0x113   : > { %v875_v60 = vshll.u32 %v831_v54, 16  ;;  %v579_v61 = vpop.f32.mrf.mxu0  ;;  %2959 = vmatprep.subr.bf16.mxu1 %v3422_v50  ;;  %v975_v10 = vrot.slane %v831_v54, 1  ;;  %v873_v11 = vshrl.u32 %v831_v54, 16  ;;  %v3438_v54 = vld [vmem:[%s5135_s3 + $0x208] sm:$0xff]  }
 0x114   : > { %v805_v0 = vsel %vm775_vm2, %v671_v56, 0.0  ;;  %v4016_v20 = vadd.f32 %v3816_v23, %v579_v61  ;;  %vm4070_vm2 = vmand %vm5145_vm5, %vm720_vm3 }
 0x115   : > { %v832_v2 = vpack.c.bf16 %v805_v0, %v805_v0  ;;  %v3210_v3 = vpop.f32.mrf.mxu0  ;;  %v877_v4 = vrot.slane %v875_v60, 1  ;;  %3254 = vmatpush3.bf16.msra.mxu0 %v3428_v45  ;;  %vm778_vm9 = vmand %vm4070_vm2, %vm760_vm8 }
 0x116   : > { %2960 = vmatpush3.bf16.msra.mxu1 %v3423_v57  ;;  %3255 = vmatprep.subr.bf16.mxu0 %v3430_v59  ;;  %v672_v14 = vmax.f32 %v4016_v20, 0.0  ;;  %vm739_vm3 = vmand %vm5143_vm1, %vm721_vm10 }
 0x117   : > { %v880_v6 = vshll.u32 %v832_v2, 16  ;;  %v976_v7 = vrot.slane %v832_v2, 1  ;;  %v584_v9 = vpop.f32.mrf.mxu0  ;;  %2961 = vmatprep.subr.bf16.mxu1 %v3424_v62  ;;  %v878_v24 = vor.u32 %v877_v4, %v873_v11  ;;  %vm4133_vm8 = vmand %vm739_vm3, %vm761_vm4 }
 0x118   : > { %v4040_v15 = vadd.f32 %v3816_v23, %v584_v9  ;;  %v806_v38 = vsel %vm4028_vm6, %v672_v14, 0.0  ;;  %vm4143_vm2 = vmand %vm721_vm10, %vm761_vm4  ;;  %v703_v9 = vadd.s32 5, %v3811_v1 }
 0x119   : > { %v882_v17 = vrot.slane %v880_v6, 1  ;;  %v3213_v19 = vpop.f32.mrf.mxu0  ;;  %v4051_v21 = vsel %vm5142_vm13, %v975_v10, %v976_v7  ;;  %3256 = vmatpush3.bf16.msra.mxu0 %v3430_v59  ;;  %vm741_vm3 = vmand %vm5145_vm5, %vm721_vm10 }
 0x11a   : > { %v673_v28 = vmax.f32 %v4040_v15, 0.0  ;;  %1856 = vmatprep.mubr.bf16.mxu0 %v4051_v21  ;;  %2962 = vmatpush3.bf16.msra.mxu1 %v3425_v5 }
 0x11b   : > { %v587_v33 = vpop.f32.mrf.mxu0  ;;  %v4087_v36 = vsel %vm5141_vm0, %v878_v24, %v882_v17  ;;  %2963 = vmatprep.subr.bf16.mxu1 %v3427_v12  ;;  %3257 = vmatprep.subr.bf16.mxu0 %v3432_v13 }
 0x11c   : > { %v807_v18 = vsel %vm4046_vm7, %v673_v28, 0.0  ;;  %v588_v34 = vadd.f32 %v3816_v23, %v587_v33  ;;  %1670 = vmatprep.mubr.bf16.mxu1 %v4087_v36  ;;  %1857 = vmatmul.mubr.bf16.gmra.mxu0 %v4087_v36  ;;  %v4171_v11 = vpack.c.bf16 %v673_v28, %v672_v14 }
 0x11d   : > { %v833_v35 = vpack.c.bf16 %v807_v18, %v806_v38  ;;  %v3214_v40 = vpop.f32.mrf.mxu0  ;;  %2789 = vmatmul.mubr.msk.bf16.gmra.mxu1 %vm4057_vm12, %v4084_v32  ;;  %3258 = vmatpush3.bf16.msra.mxu0 %v3432_v13 }
 0x11e   : > { %v674_v42 = vmax.f32 %v588_v34, 0.0  ;;  %2964 = vmatpush3.bf16.msra.mxu1 %v3429_v30  ;;  %3259 = vmatprep.subr.bf16.mxu0 %v3434_v31 }
 0x11f   : > { %v887_v44 = vshll.u32 %v833_v35, 16  ;;  %v592_v45 = vpop.f32.mrf.mxu0  ;;  %2965 = vmatprep.subr.bf16.mxu1 %v3431_v37  ;;  %v978_v60 = vrot.slane %v833_v35, 1  ;;  %v885_v61 = vshrl.u32 %v833_v35, 16 }
 0x120   : > { %v808_v49 = vsel %vm778_vm9, %v674_v42, 0.0  ;;  %v4121_v50 = vadd.f32 %v3816_v23, %v592_v45  ;;  %vm4154_vm9 = vmpackc.low %vm4046_vm7, %vm4028_vm6  ;;  %vm722_vm7 = vcmp.ge.s32.totalorder %v703_v9, 1 }
 0x121   : > { %v834_v51 = vpack.c.bf16 %v808_v49, %v808_v49  ;;  %v3217_v46 = vpop.f32.mrf.mxu0  ;;  %v889_v53 = vrot.slane %v887_v44, 1  ;;  %3260 = vmatpush3.bf16.msra.mxu0 %v3434_v31  ;;  %vm781_vm6 = vmand %vm741_vm3, %vm761_vm4  ;;  %vm762_vm4 = vcmp.le.s32.totalorder %v703_v9, 16 }
 0x122   : > { %2966 = vmatpush3.bf16.msra.mxu1 %v3433_v43  ;;  %3261 = vmatprep.subr.bf16.mxu0 %v3436_v41  ;;  %v675_v62 = vmax.f32 %v4121_v50, 0.0  ;;  %vm742_vm10 = vmand %vm5143_vm1, %vm722_vm7  ;;  %v3454_v50 = vld [vmem:[%s5137_s5 + $0x38] sm:$0xff]  }
 0x123   : > { %v892_v55 = vshll.u32 %v834_v51, 16  ;;  %v979_v56 = vrot.slane %v834_v51, 1  ;;  %v595_v59 = vpop.f32.mrf.mxu0  ;;  %3079 = vmatprep.subr.bf16.mxu1 %v3435_v48  ;;  %v890_v6 = vor.u32 %v889_v53, %v885_v61  ;;  %vm4195_vm3 = vmand %vm742_vm10, %vm762_vm4  ;;  %v704_v51 = vadd.s32 6, %v3811_v1 }
 0x124   : > { %v596_v0 = vadd.f32 %v3816_v23, %v595_v59  ;;  %v809_v16 = vsel %vm4133_vm8, %v675_v62, 0.0  ;;  %vm4214_vm10 = vmpackc.low %vm4143_vm2, %vm4133_vm8 }
 0x125   : > { %v894_v3 = vrot.slane %v892_v55, 1  ;;  %v3218_v4 = vpop.f32.mrf.mxu0  ;;  %v4148_v5 = vsel %vm5142_vm13, %v978_v60, %v979_v56  ;;  %3262 = vmatpush3.bf16.msra.mxu0 %v3436_v41  ;;  %vm744_vm11 = vmand %vm5145_vm5, %vm722_vm7 }
 0x126   : > { %v676_v10 = vmax.f32 %v596_v0, 0.0  ;;  %1864 = vmatprep.mubr.bf16.mxu0 %v4148_v5  ;;  %3263 = vmatprep.subr.bf16.mxu0 %v3438_v54  ;;  %vm784_vm8 = vmand %vm744_vm11, %vm762_vm4 }
 0x127   : > { %v600_v12 = vpop.f32.mrf.mxu0  ;;  %v4174_v13 = vsel %vm5141_vm0, %v890_v6, %v894_v3 }
 0x128   : > { %v810_v17 = vsel %vm4143_vm2, %v676_v10, 0.0  ;;  %v601_v19 = vadd.f32 %v3816_v23, %v600_v12  ;;  %1678 = vmatprep.mubr.bf16.mxu1 %v4174_v13  ;;  %1865 = vmatmul.mubr.bf16.gmra.mxu0 %v4174_v13  ;;  %v4223_v53 = vpack.c.bf16 %v676_v10, %v675_v62  ;;  %vm723_vm2 = vcmp.ge.s32.totalorder %v704_v51, 1 }
 0x129   : > { %v835_v20 = vpack.c.bf16 %v810_v17, %v809_v16  ;;  %v3221_v14 = vpop.f32.mrf.mxu0  ;;  %2792 = vmatmul.mubr.msk.bf16.gmra.mxu1 %vm4154_vm9, %v4171_v11  ;;  %3264 = vmatpush3.bf16.msra.mxu0 %v3438_v54 }
 0x12a   : > { %v677_v15 = vmax.f32 %v601_v19, 0.0  ;;  %3265 = vmatprep.subr.bf16.mxu0 %v3440_v8 }
 0x12b   : > { %v899_v24 = vshll.u32 %v835_v20, 16  ;;  %v603_v28 = vpop.f32.mrf.mxu0  ;;  %v981_v35 = vrot.slane %v835_v20, 1  ;;  %v897_v40 = vshrl.u32 %v835_v20, 16 }
 0x12c   : > { %v811_v29 = vsel %vm781_vm6, %v677_v15, 0.0  ;;  %v4189_v30 = vadd.f32 %v3816_v23, %v603_v28  ;;  %vm4203_vm6 = vmand %vm722_vm7, %vm762_vm4 }
 0x12d   : > { %v836_v27 = vpack.c.bf16 %v811_v29, %v811_v29  ;;  %v3222_v31 = vpop.f32.mrf.mxu0  ;;  %v901_v33 = vrot.slane %v899_v24, 1  ;;  %3266 = vmatpush3.bf16.msra.mxu0 %v3440_v8  ;;  %vm745_vm7 = vmand %vm5143_vm1, %vm723_vm2 }
 0x12e   : > { %v678_v42 = vmax.f32 %v4189_v30, 0.0  ;;  %v5195_v31 = vmov 0 }
 0x12f   : > { %v904_v37 = vshll.u32 %v836_v27, 16  ;;  %v982_v38 = vrot.slane %v836_v27, 1  ;;  %v608_v34 = vpop.f32.mrf.mxu0  ;;  %v902_v49 = vor.u32 %v901_v33, %v897_v40  ;;  %v705_v33 = vadd.s32 7, %v3811_v1 }
 0x130   : > { %v609_v43 = vadd.f32 %v3816_v23, %v608_v34  ;;  %v812_v56 = vsel %vm4195_vm3, %v678_v42, 0.0 }
 0x131   : > { %v906_v44 = vrot.slane %v904_v37, 1  ;;  %v3225_v45 = vpop.f32.mrf.mxu0  ;;  %v4208_v48 = vsel %vm5142_vm13, %v981_v35, %v982_v38 }
 0x132   : > { %v679_v46 = vmax.f32 %v609_v43, 0.0  ;;  %1872 = vmatprep.mubr.bf16.mxu0 %v4208_v48 }
 0x133   : > { %v611_v54 = vpop.f32.mrf.mxu0  ;;  %v4226_v55 = vsel %vm5141_vm0, %v902_v49, %v906_v44  ;;  %vm763_vm0 = vcmp.le.s32.totalorder %v704_v51, 16 }
 0x134   : > { %v813_v57 = vsel %vm4203_vm6, %v679_v46, 0.0  ;;  %v612_v59 = vadd.f32 %v3816_v23, %v611_v54  ;;  %1686 = vmatprep.mubr.bf16.mxu1 %v4226_v55  ;;  %1873 = vmatmul.mubr.bf16.gmra.mxu0 %v4226_v55  ;;  %vm4246_vm11 = vmand %vm745_vm7, %vm763_vm0  ;;  %v4274_v38 = vpack.c.bf16 %v679_v46, %v678_v42 }
 0x135   : > { %v837_v60 = vpack.c.bf16 %v813_v57, %v812_v56  ;;  %v3226_v61 = vpop.f32.mrf.mxu0  ;;  %2795 = vmatmul.mubr.msk.bf16.gmra.mxu1 %vm4214_vm10, %v4223_v53  ;;  %vm4254_vm4 = vmand %vm723_vm2, %vm763_vm0 }
 0x136   : > { %v680_v62 = vmax.f32 %v612_v59, 0.0  ;;  %vm747_vm7 = vmand %vm5145_vm5, %vm723_vm2  ;;  %vm5144_vm2 = vcmp.le.s32.totalorder %v705_v33, 16  ;;  %v4297_v59 = vadd.s32 8, %v3811_v1 }
 0x137   : > { %v911_v0 = vshll.u32 %v837_v60, 16  ;;  %v616_v2 = vpop.f32.mrf.mxu0  ;;  %v984_v19 = vrot.slane %v837_v60, 1  ;;  %v909_v20 = vshrl.u32 %v837_v60, 16 }
 0x138   : > { %v814_v3 = vsel %vm784_vm8, %v680_v62, 0.0  ;;  %v4240_v4 = vadd.f32 %v3816_v23, %v616_v2  ;;  %vm4265_vm8 = vmpackc.low %vm4203_vm6, %vm4195_vm3 }
 0x139   : > { %v838_v6 = vpack.c.bf16 %v814_v3, %v814_v3  ;;  %v3229_v9 = vpop.f32.mrf.mxu0  ;;  %v913_v10 = vrot.slane %v911_v0, 1  ;;  %v5196_v31 = vsel %vm4265_vm8, 4294967295, %v5195_v31  ;;  %vm787_vm3 = vmand %vm747_vm7, %vm763_vm0 }
 0x13a   : > { %v681_v14 = vmax.f32 %v4240_v4, 0.0 }
 0x13b   : > { %v916_v8 = vshll.u32 %v838_v6, 16  ;;  %v985_v12 = vrot.slane %v838_v6, 1  ;;  %v619_v17 = vpop.f32.mrf.mxu0  ;;  %v914_v27 = vor.u32 %v913_v10, %v909_v20 }
 0x13c   : > { %v620_v15 = vadd.f32 %v3816_v23, %v619_v17  ;;  %v815_v35 = vsel %vm4246_vm11, %v681_v14, 0.0 }
 0x13d   : > { %v918_v28 = vrot.slane %v916_v8, 1  ;;  %v3230_v29 = vpop.f32.mrf.mxu0  ;;  %v4259_v30 = vsel %vm5142_vm13, %v984_v19, %v985_v12  ;;  %vm5197_vm13 = vsmask.f32 7424  ;;  %v5203_v19 = vmov 0 }
 0x13e   : > { %v682_v37 = vmax.f32 %v620_v15, 0.0  ;;  %1880 = vmatprep.mubr.bf16.mxu0 %v4259_v30 }
 0x13f   : > { %v624_v34 = vpop.f32.mrf.mxu0  ;;  %v4277_v18 = vsel %vm5197_vm13, %v914_v27, %v918_v28  ;;  %vm724_vm13 = vcmp.ge.s32.totalorder %v705_v33, 1 }
 0x140   : > { %v816_v40 = vsel %vm4254_vm4, %v682_v37, 0.0  ;;  %v625_v43 = vadd.f32 %v3816_v23, %v624_v34  ;;  %1694 = vmatprep.mubr.bf16.mxu1 %v4277_v18  ;;  %1881 = vmatmul.mubr.bf16.gmra.mxu0 %v4277_v18  ;;  %vm748_vm6 = vmand %vm5143_vm1, %vm724_vm13  ;;  %v4327_v15 = vpack.c.bf16 %v682_v37, %v681_v14  ;;  %v4341_v14 = vadd.s32 9, %v3811_v1 }
 0x141   : > { %v839_v41 = vpack.c.bf16 %v816_v40, %v815_v35  ;;  %v3233_v42 = vpop.f32.mrf.mxu0  ;;  %2798 = vmatmul.mubr.msk.bf16.gmra.mxu1 %vm4265_vm8, %v4274_v38  ;;  %vm4300_vm0 = vmand %vm748_vm6, %vm5144_vm2 }
 0x142   : > { %v683_v44 = vmax.f32 %v625_v43, 0.0  ;;  %vm4308_vm7 = vmand %vm724_vm13, %vm5144_vm2  ;;  %vm725_vm2 = vcmp.ge.s32.totalorder %v4297_v59, 1 }
 0x143   : > { %v923_v45 = vshll.u32 %v839_v41, 16  ;;  %v627_v49 = vpop.f32.mrf.mxu0  ;;  %v987_v2 = vrot.slane %v839_v41, 1  ;;  %v921_v3 = vshrl.u32 %v839_v41, 16  ;;  %vm4319_vm6 = vmpackc.low %vm4254_vm4, %vm4246_vm11  ;;  %vm5206_vm11 = vcmp.le.s32.totalorder %v705_v33, 16 }
 0x144   : > { %v817_v46 = vsel %vm787_vm3, %v683_v44, 0.0  ;;  %v4291_v54 = vadd.f32 %v3816_v23, %v627_v49  ;;  %vm5202_vm3 = vcmask 1046528   ;;  %v5204_v19 = vsel %vm4319_vm6, 4294967295, %v5203_v19  ;;  %vm750_vm1 = vmand %vm5145_vm5, %vm724_vm13 }
 0x145   : > { %v840_v51 = vpack.c.bf16 %v817_v46, %v817_v46  ;;  %v3234_v56 = vpop.f32.mrf.mxu0  ;;  %v925_v57 = vrot.slane %v923_v45, 1  ;;  %vm790_vm4 = vmand %vm750_vm1, %vm5206_vm11  ;;  %vm5207_vm13 = vcmp.ge.s32.totalorder %v3808_v22, 1  ;;  %vm5148_vm5 = vcmp.le.s32.totalorder %v4297_v59, 16  ;;  %v3457_v46 = vld [vmem:[%s5137_s5 + $0x20] sm:$0xff]  }
 0x146   : > { %v684_v4 = vmax.f32 %v4291_v54, 0.0  ;;  %vm726_vm1 = vcmp.ge.s32.totalorder %v4341_v14, 1 }
 0x147   : > { %v928_v60 = vshll.u32 %v840_v51, 16  ;;  %v988_v61 = vrot.slane %v840_v51, 1  ;;  %v632_v0 = vpop.f32.mrf.mxu0  ;;  %v926_v17 = vor.u32 %v925_v57, %v921_v3 }
 0x148   : > { %v633_v6 = vadd.f32 %v3816_v23, %v632_v0  ;;  %v818_v16 = vsel %vm4300_vm0, %v684_v4, 0.0 }
 0x149   : > { %v930_v10 = vrot.slane %v928_v60, 1  ;;  %v3237_v8 = vpop.f32.mrf.mxu0  ;;  %v4313_v12 = vsel %vm5202_vm3, %v987_v2, %v988_v61  ;;  %vm5205_vm3 = vsmask.f32 7424 }
 0x14a   : > { %v685_v20 = vmax.f32 %v633_v6, 0.0  ;;  %1888 = vmatprep.mubr.bf16.mxu0 %v4313_v12 }
 0x14b   : > { %v635_v28 = vpop.f32.mrf.mxu0  ;;  %v4330_v29 = vsel %vm5205_vm3, %v926_v17, %v930_v10  ;;  %vm751_vm3 = vmand %vm5207_vm13, %vm725_vm2 }
 0x14c   : > { %v819_v24 = vsel %vm4308_vm7, %v685_v20, 0.0  ;;  %v636_v27 = vadd.f32 %v3816_v23, %v635_v28  ;;  %1702 = vmatprep.mubr.bf16.mxu1 %v4330_v29  ;;  %1889 = vmatmul.mubr.bf16.gmra.mxu0 %v4330_v29  ;;  %vm4358_vm11 = vmand %vm751_vm3, %vm5148_vm5  ;;  %v4410_v62 = vpack.c.bf16 %v685_v20, %v684_v4  ;;  %v3459_v28 = vld [vmem:[%s5137_s5 + $0x10] sm:$0xff]  }
 0x14d   : > { %v841_v37 = vpack.c.bf16 %v819_v24, %v818_v16  ;;  %v3238_v34 = vpop.f32.mrf.mxu0  ;;  %2801 = vmatmul.mubr.msk.bf16.gmra.mxu1 %vm4319_vm6, %v4327_v15  ;;  %vm5212_vm3 = vmmov %vm5207_vm13  ;;  %vm5216_vm13 = vcmask 1046528  }
 0x14e   : > { %v686_v35 = vmax.f32 %v636_v27, 0.0  ;;  %vm754_vm6 = vmand %vm5212_vm3, %vm726_vm1 }
 0x14f   : > { %v935_v40 = vshll.u32 %v841_v37, 16  ;;  %v640_v43 = vpop.f32.mrf.mxu0  ;;  %v990_v57 = vrot.slane %v841_v37, 1  ;;  %v933_v60 = vshrl.u32 %v841_v37, 16  ;;  %vm4394_vm3 = vmpackc.low %vm4308_vm7, %vm4300_vm0  ;;  %vm5222_vm0 = vsmask.f32 7424 }
 0x150   : > { %v820_v1 = vsel %vm790_vm4, %v686_v35, 0.0  ;;  %v4353_v41 = vadd.f32 %v3816_v23, %v640_v43  ;;  %vm4367_vm4 = vmand %vm725_vm2, %vm5148_vm5  ;;  %vm5213_vm5 = vcmp.le.s32.totalorder %v3821_v25, 16 }
 0x151   : > { %v842_v33 = vpack.c.bf16 %v820_v1, %v820_v1  ;;  %v3241_v44 = vpop.f32.mrf.mxu0  ;;  %v937_v45 = vrot.slane %v935_v40, 1  ;;  %vm4383_vm8 = vmand %vm5213_vm5, %vm725_vm2  ;;  %vm5219_vm5 = vcmp.le.s32.totalorder %v4341_v14, 16 }
 0x152   : > { %v687_v49 = vmax.f32 %v4353_v41, 0.0  ;;  %vm4406_vm2 = vmand %vm754_vm6, %vm5219_vm5 }
 0x153   : > { %v940_v54 = vshll.u32 %v842_v33, 16  ;;  %v991_v51 = vrot.slane %v842_v33, 1  ;;  %v643_v56 = vpop.f32.mrf.mxu0  ;;  %v938_v10 = vor.u32 %v937_v45, %v933_v60  ;;  %vm5223_vm7 = vmmov %vm5219_vm5  ;;  %vm5226_vm5 = vcmp.le.s32.totalorder %v4297_v59, 16 }
 0x154   : > { %v4377_v61 = vadd.f32 %v3816_v23, %v643_v56  ;;  %v821_v8 = vsel %vm4358_vm11, %v687_v49, 0.0 }
 0x155   : > { %v942_v2 = vrot.slane %v940_v54, 1  ;;  %v3242_v3 = vpop.f32.mrf.mxu0  ;;  %v4388_v6 = vsel %vm5216_vm13, %v990_v57, %v991_v51  ;;  %vm4419_vm13 = vmand %vm726_vm1, %vm5223_vm7  ;;  %v3437_v51 = vld [vmem:[%s5135_s3 + $0x1b8] sm:$0xff]  }
 0x156   : > { %v688_v17 = vmax.f32 %v4377_v61, 0.0  ;;  %1896 = vmatprep.mubr.bf16.mxu0 %v4388_v6  ;;  %vm2850_vm6 = vmpackc.low %vm4419_vm13, %vm4406_vm2  ;;  %v3458_v61 = vld [vmem:[%s5137_s5 + $0x18] sm:$0xff]  }
 0x157   : > { %v648_v9 = vpop.f32.mrf.mxu0  ;;  %v4413_v16 = vsel %vm5222_vm0, %v938_v10, %v942_v2  ;;  %vm793_vm0 = vmand %vm4383_vm8, %vm5226_vm5  ;;  %vm5230_vm5 = vsmask.f32 7424 }
 0x158   : > { %v822_v27 = vsel %vm4367_vm4, %v688_v17, 0.0  ;;  %v649_v4 = vadd.f32 %v3816_v23, %v648_v9  ;;  %1710 = vmatprep.mubr.bf16.mxu1 %v4413_v16  ;;  %1897 = vmatmul.mubr.bf16.gmra.mxu0 %v4413_v16  ;;  %vm5227_vm7 = vmpackc.low %vm3874_vm15, %vm3864_vm14  ;;  %vm5228_vm14 = vcmask 1046528   ;;  %vm5229_vm15 = vcmp.le.s32.totalorder %v3821_v25, 16 }
 0x159   : > { %v843_v20 = vpack.c.bf16 %v822_v27, %v821_v8  ;;  %2804 = vmatmul.mubr.msk.bf16.gmra.mxu1 %vm4394_vm3, %v4410_v62  ;;  %v3245_v37 = vpop.f32.mrf.mxu0  ;;  %v3441_v8 = vld [vmem:[%s5135_s3 + $0x1b0] sm:$0xff]   ;;  %vm756_vm8 = vmand %vm5229_vm15, %vm726_vm1  ;;  %vm5231_vm1 = vcmp.le.s32.totalorder %v4341_v14, 16  ;;  %vm5234_vm15 = vcmask 1046528  }
 0x15a   : > { %v689_v34 = vmax.f32 %v649_v4, 0.0  ;;  %2807 = vmatprep.mubr.msk.bf16.mxu1 %vm5227_vm7, %v3979_v47  ;;  %v3439_v47 = vld [vmem:[%s5135_s3 + $0x1f0] sm:$0xff]   ;;  %v3442_v4 = vld [vmem:[%s5135_s3 + $0x1e8] sm:$0xff]   ;;  %vm5232_vm7 = vmmov %vm5230_vm5 }
 0x15b   : > { %v1004_v35 = vshll.u32 %v843_v20, 16  ;;  %v1002_v40 = vshrl.u32 %v843_v20, 16  ;;  %v651_v43 = vpop.f32.mrf.mxu0  ;;  %v1016_v44 = vrot.slane %v843_v20, 1 }
 0x15c   : > { %v823_v59 = vsel %vm793_vm0, %v689_v34, 0.0  ;;  %v652_v1 = vadd.f32 %v3816_v23, %v651_v43  ;;  %vm796_vm0 = vmand %vm756_vm8, %vm5231_vm1  ;;  %v3443_v43 = vld [vmem:[%s5135_s3 + $0x1a8] sm:$0xff]   ;;  %vm5235_vm8 = vnez %v5204_v19 }
 0x15d   : > { %v844_v33 = vpack.c.bf16 %v823_v59, %v823_v59  ;;  %v1006_v45 = vrot.slane %v1004_v35, 1  ;;  %v3246_v54 = vpop.f32.mrf.mxu0 }
 0x15e   : > { %v690_v56 = vmax.f32 %v652_v1, 0.0  ;;  %v3444_v1 = vld [vmem:[%s5135_s3 + $0x1e0] sm:$0xff]  }
 0x15f   : > { %v1009_v58 = vshll.u32 %v844_v33, 16  ;;  %v1017_v57 = vrot.slane %v844_v33, 1  ;;  %v1007_v52 = vor.u32 %v1006_v45, %v1002_v40  ;;  %v656_v60 = vpop.f32.mrf.mxu0  ;;  %v3445_v54 = vld [vmem:[%s5135_s3 + $0x1a0] sm:$0xff]  }
 0x160   : > { %v657_v0 = vadd.f32 %v3816_v23, %v656_v60  ;;  %v824_v9 = vsel %vm4406_vm2, %v690_v56, 0.0  ;;  %v3449_v60 = vld [vmem:[%s5135_s3 + $0x190] sm:$0xff]  }
 0x161   : > { %v1011_v2 = vrot.slane %v1009_v58, 1  ;;  %1752 = vmatmul.mubr.bf16.vlgmr.msra.gmra.mxu1 %v3886_v63  ;;  %v4457_v3 = vsel %vm5228_vm14, %v1016_v44, %v1017_v57  ;;  %v3249_v10 = vpop.f32.mrf.mxu0  ;;  %v3447_v57 = vld [vmem:[%s5135_s3 + $0x198] sm:$0xff]   ;;  %vm5233_vm14 = vnez %v5196_v31 }
 0x162   : > { %3080 = vmatpush3.bf16.msra.mxu1 %v3437_v51  ;;  %2810 = vmatprep.mubr.msk.bf16.mxu1 %vm4057_vm12, %v4084_v32  ;;  %v691_v27 = vmax.f32 %v657_v0, 0.0  ;;  %v3446_v51 = vld [vmem:[%s5135_s3 + $0x1d8] sm:$0xff]   ;;  %v3450_v0 = vld [vmem:[%s5135_s3 + $0x1c8] sm:$0xff]   ;;  %v3453_v10 = vld [vmem:[%s5135_s3 + $0x180] sm:$0xff]  }
 0x163   : > { %1904 = vmatprep.mubr.bf16.mxu0 %v4457_v3  ;;  %v4473_v63 = vsel %vm5230_vm5, %v1007_v52, %v1011_v2  ;;  %3081 = vmatprep.subr.bf16.mxu1 %v3439_v47  ;;  %v659_v20 = vpop.f32.mrf.mxu0  ;;  %v3448_v52 = vld [vmem:[%s5135_s3 + $0x1d0] sm:$0xff]   ;;  %v3452_v2 = vld [vmem:[%s5135_s3 + $0x1c0] sm:$0xff]   ;;  %vm2826_vm5 = vmpackc.low %vm4367_vm4, %vm4358_vm11 }
 0x164   : > { %1905 = vmatmul.mubr.bf16.gmra.mxu0 %v4473_v63  ;;  %v825_v37 = vsel %vm4419_vm13, %v691_v27, 0.0  ;;  %v4481_v34 = vpack.c.bf16 %v691_v27, %v690_v56  ;;  %v660_v25 = vadd.f32 %v3816_v23, %v659_v20  ;;  %v3461_v20 = vld [vmem:[%s5137_s5] sm:$0xff]  }
 0x165   : > { %3267 = vmatprep.mubr.bf16.mxu0 %v4051_v21  ;;  %v845_v35 = vpack.c.bf16 %v825_v37, %v824_v9  ;;  %v3250_v40 = vpop.f32.mrf.mxu0 }
 0x166   : > { %3082 = vmatpush3.bf16.msra.mxu1 %v3441_v8  ;;  %v692_v59 = vmax.f32 %v660_v25, 0.0 }
 0x167   : > { %3083 = vmatprep.subr.bf16.mxu1 %v3442_v4  ;;  %v1023_v33 = vshll.u32 %v845_v35, 16  ;;  %v1021_v23 = vshrl.u32 %v845_v35, 16  ;;  %v1035_v9 = vrot.slane %v845_v35, 1 }
 0x168   : > { %v826_v44 = vsel %vm796_vm0, %v692_v59, 0.0 }
 0x169   : > { %1760 = vmatmul.mubr.bf16.gmra.mxu1 %v3952_v39  ;;  %v846_v45 = vpack.c.bf16 %v826_v44, %v826_v44  ;;  %v1025_v14 = vrot.slane %v1023_v33, 1 }
 0x16a   : > { %2813 = vmatprep.mubr.msk.bf16.mxu1 %vm4154_vm9, %v4171_v11  ;;  %3084 = vmatpush3.bf16.msra.mxu1 %v3443_v43 }
 0x16b   : > { %3085 = vmatprep.subr.bf16.mxu1 %v3444_v1  ;;  %v1028_v56 = vshll.u32 %v846_v45, 16  ;;  %v1026_v58 = vor.u32 %v1025_v14, %v1021_v23  ;;  %v1036_v8 = vrot.slane %v846_v45, 1 }
 0x16c   : > { %3268 = vmatmul.mubr.bf16.vlgmr.msra.gmra.mxu0 %v4148_v5 }
 0x16d   : > { %3271 = vmatprep.mubr.bf16.mxu0 %v4208_v48  ;;  %v1030_v39 = vrot.slane %v1028_v56, 1 }
 0x16e   : > { %3086 = vmatpush3.bf16.msra.mxu1 %v3445_v54 }
 0x16f   : > { %3087 = vmatprep.subr.bf16.mxu1 %v3446_v51  ;;  %v1031_v47 = vsel %vm5232_vm7, %v1026_v58, %v1030_v39 }
 0x171   : > { %1768 = vmatmul.mubr.bf16.gmra.mxu1 %v4051_v21  ;;  %v3451_v21 = vld [vmem:[%s5135_s3 + $0x188] sm:$0xff]  }
 0x172   : > { %2816 = vmatprep.mubr.msk.bf16.mxu1 %vm4214_vm10, %v4223_v53  ;;  %3088 = vmatpush3.bf16.msra.mxu1 %v3447_v57 }
 0x173   : > { %3089 = vmatprep.subr.bf16.mxu1 %v3448_v52 }
 0x174   : > { %3272 = vmatmul.mubr.bf16.gmra.mxu0 %v4259_v30 }
 0x175   : > { %3275 = vmatprep.mubr.bf16.mxu0 %v4313_v12 }
 0x176   : > { %3090 = vmatpush3.bf16.msra.mxu1 %v3449_v60 }
 0x177   : > { %3091 = vmatprep.subr.bf16.mxu1 %v3450_v0 }
 0x179   : > { %1776 = vmatmul.mubr.bf16.gmra.mxu1 %v4148_v5  ;;  %v1037_v5 = vsel %vm5234_vm15, %v1035_v9, %v1036_v8 }
 0x17a   : > { %2819 = vmatprep.mubr.msk.bf16.mxu1 %vm5233_vm14, %v4274_v38  ;;  %3092 = vmatpush3.bf16.msra.mxu1 %v3451_v21 }
 0x17b   : > { %3093 = vmatprep.subr.bf16.mxu1 %v3452_v2 }
 0x17c   : > { %3276 = vmatmul.mubr.bf16.gmra.mxu0 %v4388_v6 }
 0x17d   : > { %3279 = vmatprep.mubr.bf16.mxu0 %v4457_v3  ;;  %v2827_v3 = vpack.c.bf16 %v688_v17, %v687_v49 }
 0x17e   : > { %3094 = vmatpush3.bf16.msra.mxu1 %v3453_v10 }
 0x17f   : > { %3283 = vmatprep.subr.bf16.mxu1 %v3454_v50 }
 0x181   : > { %1784 = vmatmul.mubr.bf16.gmra.mxu1 %v4208_v48 }
 0x182   : > { %2822 = vmatprep.mubr.msk.bf16.mxu1 %vm5235_vm8, %v4327_v15 }
 0x184   : > { %3280 = vmatmul.mubr.bf16.gmra.mxu0 %v1037_v5 }
 0x189   : > { %1792 = vmatmul.mubr.bf16.gmra.mxu1 %v4259_v30 }
 0x18a   : > { %2825 = vmatprep.mubr.msk.bf16.mxu1 %vm4394_vm3, %v4410_v62 }
 0x191   : > { %1800 = vmatmul.mubr.bf16.gmra.mxu1 %v4313_v12 }
 0x192   : > { %2828 = vmatprep.mubr.msk.bf16.mxu1 %vm2826_vm5, %v2827_v3 }
 0x199   : > { %1808 = vmatmul.mubr.bf16.gmra.mxu1 %v4388_v6 }
 0x19a   : > { %1945 = vmatprep.mubr.bf16.mxu1 %v4087_v36 }
 0x1a1   : > { %2831 = vmatmul.mubr.msk.bf16.vlgmr.msra.gmra.mxu1 %vm4057_vm12, %v4084_v32  ;;  %vm2131_vm12 = vsmask.f32 3328 }
 0x1a2   : > { %1953 = vmatprep.mubr.bf16.mxu1 %v4174_v13  ;;  %3284 = vmatpush3.bf16.msra.mxu1 %v3454_v50 }
 0x1a9   : > { %2834 = vmatmul.mubr.msk.bf16.gmra.mxu1 %vm4154_vm9, %v4171_v11  ;;  %vm2132_vm9 = vsmask.f32 7440 }
 0x1aa   : > { %1961 = vmatprep.mubr.bf16.mxu1 %v4226_v55 }
 0x1b1   : > { %2837 = vmatmul.mubr.msk.bf16.gmra.mxu1 %vm4214_vm10, %v4223_v53  ;;  %vm4700_vm10 = vmor %vm2131_vm12, %vm2132_vm9 }
 0x1b2   : > { %1969 = vmatprep.mubr.bf16.mxu1 %v4277_v18  ;;  %v3455_v18 = vld [vmem:[%s5137_s5 + $0x30] sm:$0xff]  }
 0x1b3   : > { %3285 = vmatprep.subr.bf16.mxu1 %v3455_v18 }
 0x1b4   : > { %3286 = vmatpush3.bf16.msra.mxu1 %v3455_v18  ;;  %v3462_v18 = vld [vmem:[%s3626_s23 + $0x18] sm:$0xf] }
 0x1b9   : > { %2840 = vmatmul.mubr.msk.bf16.gmra.mxu1 %vm5233_vm14, %v4274_v38 }
 0x1ba   : > { %1977 = vmatprep.mubr.bf16.mxu1 %v4330_v29  ;;  %v3456_v29 = vld [vmem:[%s5137_s5 + $0x28] sm:$0xff]  }
 0x1bb   : > { %3287 = vmatprep.subr.bf16.mxu1 %v3456_v29 }
 0x1bc   : > { %3288 = vmatpush3.bf16.msra.mxu1 %v3456_v29 }
 0x1bd   : > { %3289 = vmatprep.subr.bf16.mxu1 %v3457_v46 }
 0x1c0   : > { %3290 = vmatpush3.bf16.msra.mxu1 %v3457_v46 }
 0x1c1   : > { %2843 = vmatmul.mubr.msk.bf16.gmra.mxu1 %vm5235_vm8, %v4327_v15  ;;  %3291 = vmatprep.subr.bf16.mxu1 %v3458_v61 }
 0x1c2   : > { %1985 = vmatprep.mubr.bf16.mxu1 %v4413_v16 }
 0x1c4   : > { %3292 = vmatpush3.bf16.msra.mxu1 %v3458_v61  ;;  %v4688_v61 = vld [vmem:[%s3626_s23 + $0x1c] sm:$0xf] }
 0x1c5   : > { %v2903_v26 = vpop.f32.mrf.mxu1  ;;  %3293 = vmatprep.subr.bf16.mxu1 %v3459_v28  ;;  %5236 = vst [vmem:[#allocation2_spill] sm:$0xff] %v4688_v61 }
 0x1c7   : > { %v2904_v32 = vpop.f32.mrf.mxu1 }
 0x1c8   : > { %v4584_v36 = vadd.f32 %v2904_v32, %v2903_v26  ;;  %3294 = vmatpush3.bf16.msra.mxu1 %v3459_v28 }
 0x1c9   : > { %v2906_v7 = vpop.f32.mrf.mxu1  ;;  %2846 = vmatmul.mubr.msk.bf16.gmra.mxu1 %vm4394_vm3, %v4410_v62 }
 0x1ca   : > { %1993 = vmatprep.mubr.bf16.mxu1 %v4473_v63  ;;  %v3460_v63 = vld [vmem:[%s5137_s5 + $0x8] sm:$0xff]  }
 0x1cb   : > { %v2907_v11 = vpop.f32.mrf.mxu1  ;;  %3295 = vmatprep.subr.bf16.mxu1 %v3460_v63 }
 0x1cc   : > { %v4590_v13 = vadd.f32 %v2907_v11, %v2906_v7  ;;  %3296 = vmatpush3.bf16.msra.mxu1 %v3460_v63 }
 0x1cd   : > { %3297 = vmatprep.subr.bf16.mxu1 %v3461_v20 }
 0x1d0   : > { %v4631_v62 = vpop.f32.mrf.mxu0  ;;  %3298 = vmatpush3.bf16.msra.mxu1 %v3461_v20 }
 0x1d1   : > { %v2909_v48 = vpop.f32.mrf.mxu1  ;;  %2849 = vmatmul.mubr.msk.bf16.gmra.mxu1 %vm2826_vm5, %v2827_v3 }
 0x1d2   : > { %2001 = vmatprep.mubr.bf16.mxu1 %v1031_v47  ;;  %v3032_v4 = vpop.f32.mrf.mxu0 }
 0x1d3   : > { %v2910_v53 = vpop.f32.mrf.mxu1  ;;  %v3033_v63 = vadd.f32 %v3032_v4, %v4631_v62 }
 0x1d4   : > { %v4600_v55 = vadd.f32 %v2910_v53, %v2909_v48  ;;  %v4641_v37 = vpop.f32.mrf.mxu0 }
 0x1d5   : > { %v2912_v30 = vpop.f32.mrf.mxu1 }
 0x1d6   : > { %v4645_v40 = vpop.f32.mrf.mxu0 }
 0x1d7   : > { %v2913_v31 = vpop.f32.mrf.mxu1 }
 0x1d8   : > { %v4602_v38 = vadd.f32 %v2913_v31, %v2912_v30  ;;  %v4680_v30 = vld [vmem:[%s5136_s4] ss:$0 sm:$0xff] }
 0x1d9   : > { %2852 = vmatmul.mubr.msk.bf16.gmra.mxu1 %vm2850_vm6, %v4481_v34  ;;  %v1665_v62 = vadd.f32 %v4600_v55, %v4680_v30 }
 0x1dc   : > { %v4647_v59 = vpop.f32.mrf.mxu0 }
 0x1dd   : > { %v2915_v12 = vpop.f32.mrf.mxu1 }
 0x1de   : > { %v3038_v23 = vpop.f32.mrf.mxu0 }
 0x1df   : > { %v2916_v19 = vpop.f32.mrf.mxu1 }
 0x1e0   : > { %v4613_v15 = vadd.f32 %v2916_v19, %v2915_v12  ;;  %v4651_v45 = vpop.f32.mrf.mxu0  ;;  %v2159_v12 = vshrl.u32 %v3462_v18, 16  ;;  %v2162_v19 = vshll.u32 %v3462_v18, 16 }
 0x1e1   : > { %v2918_v41 = vpop.f32.mrf.mxu1 }
 0x1e2   : > { %v4655_v56 = vpop.f32.mrf.mxu0 }
 0x1e3   : > { %v2919_v42 = vpop.f32.mrf.mxu1 }
 0x1e4   : > { %v4618_v49 = vadd.f32 %v2919_v42, %v2918_v41  ;;  %v1657_v42 = vadd.f32 %v4584_v36, %v4680_v30 }
 0x1e8   : > { %v4659_v57 = vpop.f32.mrf.mxu0 }
 0x1e9   : > { %v2921_v6 = vpop.f32.mrf.mxu1 }
 0x1ea   : > { %v3044_v52 = vpop.f32.mrf.mxu0 }
 0x1eb   : > { %v2922_v22 = vpop.f32.mrf.mxu1 }
 0x1ec   : > { %v4626_v17 = vadd.f32 %v2922_v22, %v2921_v6  ;;  %v4663_v21 = vpop.f32.mrf.mxu0  ;;  %v2168_v6 = vshll.u32 %v4688_v61, 16 }
 0x1ed   : > { %v2924_v16 = vpop.f32.mrf.mxu1 }
 0x1ee   : > { %v4667_v9 = vpop.f32.mrf.mxu0  ;;  %v4698_v36 = vrot.slane %v2168_v6, 5 }
 0x1ef   : > { %v2925_v24 = vpop.f32.mrf.mxu1 }
 0x1f0   : > { %v4633_v27 = vadd.f32 %v2925_v24, %v2924_v16  ;;  %v2161_v16 = vrot.slane %v2159_v12, 4  ;;  %v2164_v24 = vrot.slane %v2162_v19, 5  ;;  %5237 = vst [vmem:[#allocation3_spill] sm:$0xff] %v4698_v36  ;;  %v1673_v12 = vadd.f32 %v4613_v15, %v4680_v30 }
 0x1f4   : > { %v4669_v5 = vpop.f32.mrf.mxu0 }
 0x1f5   : > { %v2927_v34 = vpop.f32.mrf.mxu1 }
 0x1f6   : > { %v3050_v26 = vpop.f32.mrf.mxu0 }
 0x1f7   : > { %v2928_v25 = vpop.f32.mrf.mxu1 }
 0x1f8   : > { %v4643_v35 = vadd.f32 %v2928_v25, %v2927_v34  ;;  %v4673_v48 = vpop.f32.mrf.mxu0 }
 0x1f9   : > { %v2930_v43 = vpop.f32.mrf.mxu1 }
 0x1fa   : > { %v4683_v29 = vpop.f32.mrf.mxu0 }
 0x1fb   : > { %v2931_v1 = vpop.f32.mrf.mxu1 }
 0x1fc   : > { %v4649_v33 = vadd.f32 %v2931_v1, %v2930_v43 }
 0x200   : > { %v3055_v22 = vpop.f32.mrf.mxu0 }
 0x201   : > { %v2933_v44 = vpop.f32.mrf.mxu1 }
 0x202   : > { %v3056_v43 = vpop.f32.mrf.mxu0 }
 0x203   : > { %v2934_v14 = vpop.f32.mrf.mxu1 }
 0x204   : > { %v4653_v54 = vadd.f32 %v2934_v14, %v2933_v44  ;;  %v2165_v44 = vor.u32 %v2164_v24, %v2161_v16 }
 0x205   : > { %v2936_v51 = vpop.f32.mrf.mxu1 }
 0x207   : > { %v2937_v58 = vpop.f32.mrf.mxu1 }
 0x208   : > { %v4657_v39 = vadd.f32 %v2937_v58, %v2936_v51  ;;  %v5238_v51 = vmov 0  ;;  %v4706_v58 = vrot.slane %v2165_v44, 4  ;;  %v3051_v44 = vadd.f32 %v3050_v26, %v4669_v5 }
 0x209   : > { %v5239_v51 = vsel %vm4700_vm10, 4294967295, %v5238_v51 }
 0x20a   : > { %5240 = vst [vmem:[#allocation4_spill] sm:$0xff] %v5239_v51  ;;  %5241 = vst [vmem:[#allocation5_spill] sm:$0xff] %v4706_v58 }
 0x20d   : > { %v2939_v47 = vpop.f32.mrf.mxu1 }
 0x20f   : > { %v2940_v60 = vpop.f32.mrf.mxu1 }
 0x210   : > { %v4661_v0 = vadd.f32 %v2940_v60, %v2939_v47  ;;  %v4708_v47 = vpop.f32.mrf.mxu0 }
 0x211   : > { %v2942_v2 = vpop.f32.mrf.mxu1 }
 0x212   : > { %v4721_v55 = vpop.f32.mrf.mxu0 }
 0x213   : > { %v2943_v10 = vpop.f32.mrf.mxu1 }
 0x214   : > { %v4665_v8 = vadd.f32 %v2943_v10, %v2942_v2  ;;  %v3039_v2 = vadd.f32 %v3038_v23, %v4647_v59  ;;  %v3045_v23 = vadd.f32 %v3044_v52, %v4659_v57 }
 0x219   : > { %v2945_v3 = vpop.f32.mrf.mxu1 }
 0x21b   : > { %v2946_v32 = vpop.f32.mrf.mxu1 }
 0x21c   : > { %v4671_v7 = vadd.f32 %v2946_v32, %v2945_v3 }
 0x21d   : > { %v2948_v11 = vpop.f32.mrf.mxu1 }
 0x21f   : > { %v2949_v50 = vpop.f32.mrf.mxu1 }
 0x220   : > { %v4675_v53 = vadd.f32 %v2949_v50, %v2948_v11 }
 0x221   : > { %v2967_v31 = vpop.f32.mrf.mxu1 }
 0x223   : > { %v2968_v41 = vpop.f32.mrf.mxu1 }
 0x224   : > { %v2969_v46 = vadd.f32 %v2968_v41, %v2967_v31  ;;  %v3061_v31 = vpop.f32.mrf.mxu0 }
 0x225   : > { %v4691_v28 = vpop.f32.mrf.mxu1 }
 0x226   : > { %v1754_v20 = vadd.f32 %v2969_v46, %v1657_v42  ;;  %v3062_v42 = vpop.f32.mrf.mxu0 }
 0x227   : > { %v4694_v34 = vpop.f32.mrf.mxu1 }
 0x228   : > { %v4696_v25 = vadd.f32 %v3033_v63, %v1754_v20  ;;  %v4732_v24 = vpop.f32.mrf.mxu0  ;;  %v1681_v20 = vadd.f32 %v4626_v17, %v4680_v30 }
 0x229   : > { %v2973_v1 = vpop.f32.mrf.mxu1 }
 0x22a   : > { %v4739_v57 = vpop.f32.mrf.mxu0 }
 0x22b   : > { %v2974_v14 = vpop.f32.mrf.mxu1 }
 0x22c   : > { %v2975_v4 = vadd.f32 %v2974_v14, %v2973_v1 }
 0x22d   : > { %v4710_v60 = vpop.f32.mrf.mxu1 }
 0x22e   : > { %v1762_v10 = vadd.f32 %v2975_v4, %v1665_v62  ;;  %v3067_v4 = vpop.f32.mrf.mxu0 }
 0x22f   : > { %v4717_v32 = vpop.f32.mrf.mxu1 }
 0x230   : > { %v4719_v11 = vadd.f32 %v3039_v2, %v1762_v10  ;;  %v3068_v17 = vpop.f32.mrf.mxu0 }
 0x231   : > { %v2979_v50 = vpop.f32.mrf.mxu1 }
 0x233   : > { %v2980_v18 = vpop.f32.mrf.mxu1 }
 0x234   : > { %v2981_v19 = vadd.f32 %v2980_v18, %v2979_v50  ;;  %v1689_v50 = vadd.f32 %v4643_v35, %v4680_v30 }
 0x235   : > { %v4725_v59 = vpop.f32.mrf.mxu1 }
 0x236   : > { %v1770_v41 = vadd.f32 %v2981_v19, %v1673_v12  ;;  %v3057_v19 = vadd.f32 %v3056_v43, %v3055_v22 }
 0x237   : > { %v4728_v46 = vpop.f32.mrf.mxu1 }
 0x238   : > { %v4730_v6 = vadd.f32 %v3045_v23, %v1770_v41  ;;  %v4753_v41 = vpop.f32.mrf.mxu0 }
 0x239   : > { %v2985_v16 = vpop.f32.mrf.mxu1 }
 0x23b   : > { %v2986_v63 = vpop.f32.mrf.mxu1 }
 0x23c   : > { %v2987_v1 = vadd.f32 %v2986_v63, %v2985_v16 }
 0x23d   : > { %v4736_v15 = vpop.f32.mrf.mxu1 }
 0x23e   : > { %v1778_v14 = vadd.f32 %v2987_v1, %v1681_v20  ;;  %v1697_v20 = vadd.f32 %v4653_v54, %v4680_v30 }
 0x23f   : > { %v4741_v52 = vpop.f32.mrf.mxu1 }
 0x240   : > { %v4743_v62 = vadd.f32 %v3051_v44, %v1778_v14  ;;  %v4757_v44 = vpop.f32.mrf.mxu0  ;;  %v3063_v14 = vadd.f32 %v3062_v42, %v3061_v31 }
 0x241   : > { %v2991_v2 = vpop.f32.mrf.mxu1 }
 0x242   : > { %v3073_v22 = vpop.f32.mrf.mxu0 }
 0x243   : > { %v2992_v10 = vpop.f32.mrf.mxu1 }
 0x244   : > { %v2993_v18 = vadd.f32 %v2992_v10, %v2991_v2 }
 0x245   : > { %v4747_v12 = vpop.f32.mrf.mxu1 }
 0x246   : > { %v1786_v23 = vadd.f32 %v2993_v18, %v1689_v50  ;;  %v3074_v18 = vpop.f32.mrf.mxu0 }
 0x247   : > { %v4749_v5 = vpop.f32.mrf.mxu1 }
 0x248   : > { %v4751_v26 = vadd.f32 %v3057_v19, %v1786_v23  ;;  %v1705_v23 = vadd.f32 %v4661_v0, %v4680_v30  ;;  %v4769_v58 = vpop.f32.mrf.mxu0 }
 0x249   : > { %v2997_v16 = vpop.f32.mrf.mxu1  ;;  %5242 = vst [vmem:[#allocation6_spill] sm:$0xff] %v4769_v58 }
 0x24b   : > { %v2998_v63 = vpop.f32.mrf.mxu1 }
 0x24c   : > { %v2999_v1 = vadd.f32 %v2998_v63, %v2997_v16  ;;  %v3069_v16 = vadd.f32 %v3068_v17, %v3067_v4  ;;  %v2972_v17 = vadd.f32 %v4694_v34, %v4691_v28  ;;  %v2978_v28 = vadd.f32 %v4717_v32, %v4710_v60 }
 0x24d   : > { %v4759_v35 = vpop.f32.mrf.mxu1 }
 0x24e   : > { %v1794_v2 = vadd.f32 %v2999_v1, %v1697_v20  ;;  %v4775_v1 = vpop.f32.mrf.mxu0 }
 0x24f   : > { %v4761_v43 = vpop.f32.mrf.mxu1  ;;  %5243 = vst [vmem:[#allocation7_spill] sm:$0xff] %v4775_v1 }
 0x250   : > { %v4763_v10 = vadd.f32 %v3063_v14, %v1794_v2  ;;  %v1713_v2 = vadd.f32 %v4671_v7, %v4680_v30  ;;  %v3269_v4 = vpop.f32.mrf.mxu0 }
 0x251   : > { %v3003_v50 = vpop.f32.mrf.mxu1 }
 0x252   : > { %v2044_v36 = vpop.f32.mrf.mxu0 }
 0x253   : > { %v3004_v19 = vpop.f32.mrf.mxu1 }
 0x254   : > { %v3005_v3 = vadd.f32 %v3004_v19, %v3003_v50  ;;  %v3075_v50 = vadd.f32 %v3074_v18, %v3073_v22  ;;  %v3270_v18 = vpop.f32.mrf.mxu0 }
 0x255   : > { %v4767_v54 = vpop.f32.mrf.mxu1 }
 0x256   : > { %v1802_v63 = vadd.f32 %v3005_v3, %v1705_v23 }
 0x257   : > { %v4771_v31 = vpop.f32.mrf.mxu1 }
 0x258   : > { %v4773_v42 = vadd.f32 %v3069_v16, %v1802_v63  ;;  %v1660_v63 = vadd.f32 %v4590_v13, %v4680_v30  ;;  %v1668_v13 = vadd.f32 %v4602_v38, %v4680_v30  ;;  %v2984_v38 = vadd.f32 %v4728_v46, %v4725_v59 }
 0x259   : > { %v3009_v20 = vpop.f32.mrf.mxu1 }
 0x25a   : > { %v1757_v7 = vadd.f32 %v2972_v17, %v1660_v63  ;;  %v1765_v63 = vadd.f32 %v2978_v28, %v1668_v13 }
 0x25b   : > { %v3010_v14 = vpop.f32.mrf.mxu1 }
 0x25c   : > { %v3011_v51 = vadd.f32 %v3010_v14, %v3009_v20 }
 0x25d   : > { %v4779_v0 = vpop.f32.mrf.mxu1 }
 0x25e   : > { %v1810_v19 = vadd.f32 %v3011_v51, %v1713_v2  ;;  %v3036_v51 = vadd.f32 %v4645_v40, %v4641_v37 }
 0x25f   : > { %v4781_v3 = vpop.f32.mrf.mxu1 }
 0x260   : > { %v4785_v23 = vadd.f32 %v3075_v50, %v1810_v19  ;;  %v1854_v34 = vadd.f32 %v3036_v51, %v1757_v7 }
 0x261   : > { %v3095_v16 = vpop.f32.mrf.mxu1 }
 0x262   : > { %5244 = vst [vmem:[#allocation8_spill] sm:$0xff] %v4785_v23 }
 0x263   : > { %v3096_v61 = vpop.f32.mrf.mxu1 }
 0x264   : > { %v3097_v20 = vadd.f32 %v3096_v61, %v3095_v16  ;;  %v2047_v61 = vpop.f32.mrf.mxu0 }
 0x265   : > { %v3098_v14 = vpop.f32.mrf.mxu1 }
 0x266   : > { %v1948_v22 = vadd.f32 %v3097_v20, %v4696_v25  ;;  %v3042_v25 = vadd.f32 %v4655_v56, %v4651_v45  ;;  %v3273_v32 = vpop.f32.mrf.mxu0 }
 0x267   : > { %v3099_v2 = vpop.f32.mrf.mxu1 }
 0x268   : > { %v3100_v50 = vadd.f32 %v3099_v2, %v3098_v14  ;;  %v2045_v23 = vadd.f32 %v2044_v36, %v1948_v22  ;;  %v1862_v36 = vadd.f32 %v3042_v25, %v1765_v63  ;;  %v1676_v2 = vadd.f32 %v4618_v49, %v4680_v30  ;;  %v2060_v45 = vpop.f32.mrf.mxu0 }
 0x269   : > { %v3101_v19 = vpop.f32.mrf.mxu1  ;;  %v2990_v49 = vadd.f32 %v4741_v52, %v4736_v15 }
 0x26a   : > { %v1951_v17 = vadd.f32 %v3100_v50, %v1854_v34  ;;  %v2107_v20 = vmax.f32 %v2045_v23, 0.0  ;;  %v3274_v13 = vpop.f32.mrf.mxu0 }
 0x26b   : > { %v3102_v16 = vpop.f32.mrf.mxu1 }
 0x26c   : > { %v2048_v1 = vadd.f32 %v2047_v61, %v1951_v17  ;;  %v3103_v37 = vadd.f32 %v3102_v16, %v3101_v19  ;;  %v3048_v19 = vadd.f32 %v4667_v9, %v4663_v21  ;;  %v2063_v21 = vpop.f32.mrf.mxu0 }
 0x26d   : > { %v3104_v40 = vpop.f32.mrf.mxu1 }
 0x26e   : > { %v2108_v58 = vmax.f32 %v2048_v1, 0.0  ;;  %v1956_v60 = vadd.f32 %v3103_v37, %v4719_v11  ;;  %v1773_v1 = vadd.f32 %v2984_v38, %v1676_v2 }
 0x26f   : > { %v3105_v7 = vpop.f32.mrf.mxu1 }
 0x270   : > { %v3106_v14 = vadd.f32 %v3105_v7, %v3104_v40  ;;  %v2123_v51 = vpack.c.bf16 %v2108_v58, %v2107_v20  ;;  %v2053_v28 = vadd.f32 %v3269_v4, %v1956_v60  ;;  %v1870_v61 = vadd.f32 %v3048_v19, %v1773_v1 }
 0x271   : > { %v3107_v22 = vpop.f32.mrf.mxu1  ;;  %v3054_v7 = vadd.f32 %v4683_v29, %v4673_v48 }
 0x272   : > { %v1959_v34 = vadd.f32 %v3106_v14, %v1862_v36  ;;  %3299 = vmatprep.mubr.bf16.mxu1 %v2123_v51  ;;  %v2109_v59 = vmax.f32 %v2053_v28, 0.0  ;;  %v3277_v36 = vpop.f32.mrf.mxu0 }
 0x273   : > { %v3108_v56 = vpop.f32.mrf.mxu1 }
 0x274   : > { %v2056_v23 = vadd.f32 %v3270_v18, %v1959_v34  ;;  %v3109_v11 = vadd.f32 %v3108_v56, %v3107_v22  ;;  %v1684_v18 = vadd.f32 %v4633_v27, %v4680_v30  ;;  %v2996_v27 = vadd.f32 %v4749_v5, %v4747_v12  ;;  %v2076_v48 = vpop.f32.mrf.mxu0 }
 0x275   : > { %v3110_v50 = vpop.f32.mrf.mxu1  ;;  %v1692_v34 = vadd.f32 %v4649_v33, %v4680_v30  ;;  %v3002_v33 = vadd.f32 %v4761_v43, %v4759_v35 }
 0x276   : > { %v2110_v46 = vmax.f32 %v2056_v23, 0.0  ;;  %v1964_v58 = vadd.f32 %v3109_v11, %v4730_v6  ;;  %v1781_v25 = vadd.f32 %v2990_v49, %v1684_v18 }
 0x277   : > { %v3111_v17 = vpop.f32.mrf.mxu1  ;;  %v1789_v1 = vadd.f32 %v2996_v27, %v1692_v34 }
 0x278   : > { %v2124_v4 = vpack.c.bf16 %v2110_v46, %v2109_v59  ;;  %v3112_v16 = vadd.f32 %v3111_v17, %v3110_v50  ;;  %v2061_v37 = vadd.f32 %v2060_v45, %v1964_v58  ;;  %v1878_v51 = vadd.f32 %v3054_v7, %v1781_v25  ;;  %v3278_v59 = vpop.f32.mrf.mxu0 }
 0x279   : > { %v3113_v63 = vpop.f32.mrf.mxu1  ;;  %v3060_v50 = vadd.f32 %v4721_v55, %v4708_v47  ;;  %v1708_v7 = vadd.f32 %v4665_v8, %v4680_v30  ;;  %v3014_v8 = vadd.f32 %v4781_v3, %v4779_v0 }
 0x27a   : > { %v1967_v40 = vadd.f32 %v3112_v16, %v1870_v61  ;;  %3300 = vmatmul.mubr.bf16.vlgmr.msra.gmra.mxu1 %v2124_v4  ;;  %v2111_v15 = vmax.f32 %v2061_v37, 0.0  ;;  %v2079_v47 = vpop.f32.mrf.mxu0  ;;  %v3066_v37 = vadd.f32 %v4739_v57, %v4732_v24 }
 0x27b   : > { %v3114_v9 = vpop.f32.mrf.mxu1 }
 0x27c   : > { %v2064_v20 = vadd.f32 %v2063_v21, %v1967_v40  ;;  %v3115_v6 = vadd.f32 %v3114_v9, %v3113_v63  ;;  %v3281_v21 = vpop.f32.mrf.mxu0 }
 0x27d   : > { %v3116_v60 = vpop.f32.mrf.mxu1 }
 0x27e   : > { %v2112_v52 = vmax.f32 %v2064_v20, 0.0  ;;  %v1972_v38 = vadd.f32 %v3115_v6, %v4743_v62  ;;  %v2092_v24 = vpop.f32.mrf.mxu0 }
 0x27f   : > { %v3117_v14 = vpop.f32.mrf.mxu1 }
 0x280   : > { %v3118_v22 = vadd.f32 %v3117_v14, %v3116_v60  ;;  %v2125_v2 = vpack.c.bf16 %v2112_v52, %v2111_v15  ;;  %v2069_v45 = vadd.f32 %v3273_v32, %v1972_v38  ;;  %v1886_v32 = vadd.f32 %v3060_v50, %v1789_v1  ;;  %v5245_v50 = vld [vmem:[#allocation6_spill] sm:$0xff] }
 0x281   : > { %v3119_v28 = vpop.f32.mrf.mxu1 }
 0x282   : > { %v1975_v56 = vadd.f32 %v3118_v22, %v1878_v51  ;;  %3303 = vmatprep.mubr.bf16.mxu1 %v2125_v2  ;;  %v2113_v12 = vmax.f32 %v2069_v45, 0.0  ;;  %v3072_v51 = vadd.f32 %v4757_v44, %v4753_v41  ;;  %v3282_v2 = vpop.f32.mrf.mxu0 }
 0x283   : > { %v3120_v29 = vpop.f32.mrf.mxu1 }
 0x284   : > { %v2072_v23 = vadd.f32 %v3274_v13, %v1975_v56  ;;  %v3121_v62 = vadd.f32 %v3120_v29, %v3119_v28  ;;  %v1700_v13 = vadd.f32 %v4657_v39, %v4680_v30  ;;  %v3008_v39 = vadd.f32 %v4771_v31, %v4767_v54  ;;  %v2095_v41 = vpop.f32.mrf.mxu0 }
 0x285   : > { %v3122_v11 = vpop.f32.mrf.mxu1 }
 0x286   : > { %v2114_v5 = vmax.f32 %v2072_v23, 0.0  ;;  %v1980_v19 = vadd.f32 %v3121_v62, %v4751_v26  ;;  %v1797_v16 = vadd.f32 %v3002_v33, %v1700_v13  ;;  %v1805_v38 = vadd.f32 %v3008_v39, %v1708_v7 }
 0x287   : > { %v3123_v46 = vpop.f32.mrf.mxu1 }
 0x288   : > { %v3124_v58 = vadd.f32 %v3123_v46, %v3122_v11  ;;  %v2126_v17 = vpack.c.bf16 %v2114_v5, %v2113_v12  ;;  %v2077_v4 = vadd.f32 %v2076_v48, %v1980_v19  ;;  %v1894_v25 = vadd.f32 %v3066_v37, %v1797_v16  ;;  %v5246_v12 = vld [vmem:[#allocation7_spill] sm:$0xff]  ;;  %v5247_v19 = vld [vmem:[#allocation8_spill] sm:$0xff]  ;;  %v5248_v16 = vld [vmem:[#allocation2_spill] sm:$0xff] }
 0x289   : > { %v3125_v49 = vpop.f32.mrf.mxu1  ;;  %v1716_v48 = vadd.f32 %v4675_v53, %v4680_v30  ;;  %v3078_v5 = vadd.f32 %v5246_v12, %v5245_v50  ;;  %v3465_v37 = vld [vmem:[%s3626_s23 + $0x10] sm:$0xf]  ;;  %v3472_v12 = vld [vmem:[%s3626_s23 + $0x38] sm:$0xf] }
 0x28a   : > { %v1983_v61 = vadd.f32 %v3124_v58, %v1886_v32  ;;  %3304 = vmatmul.mubr.bf16.gmra.mxu1 %v2126_v17  ;;  %v2115_v35 = vmax.f32 %v2077_v4, 0.0 }
 0x28b   : > { %v3126_v55 = vpop.f32.mrf.mxu1  ;;  %v1813_v23 = vadd.f32 %v3014_v8, %v1716_v48  ;;  %v3470_v48 = vld [vmem:[%s3626_s23 + $0x34] sm:$0xf] }
 0x28c   : > { %v2080_v63 = vadd.f32 %v2079_v47, %v1983_v61  ;;  %v3127_v26 = vadd.f32 %v3126_v55, %v3125_v49  ;;  %v3464_v61 = vld [vmem:[%s3626_s23 + $0xc] sm:$0xf] }
 0x28d   : > { %v3128_v18 = vpop.f32.mrf.mxu1  ;;  %v1910_v33 = vadd.f32 %v3078_v5, %v1813_v23  ;;  %v2135_v47 = vshrl.u32 %v3464_v61, 16  ;;  %v2138_v55 = vshll.u32 %v3464_v61, 16  ;;  %v3471_v23 = vld [vmem:[%s3626_s23 + $0x28] sm:$0xf]  ;;  %v2226_v5 = vshll.u32 %v3472_v12, 16 }
 0x28e   : > { %v2116_v43 = vmax.f32 %v2080_v63, 0.0  ;;  %v1988_v40 = vadd.f32 %v3127_v26, %v4763_v10  ;;  %v2172_v63 = vshrl.u32 %v5248_v16, 16 }
 0x28f   : > { %v3129_v9 = vpop.f32.mrf.mxu1  ;;  %v2137_v26 = vrot.slane %v2135_v47, 4  ;;  %v3474_v47 = vld [vmem:[%s3626_s23 + $0x48] sm:$0xf] }
 0x290   : > { %v3130_v20 = vadd.f32 %v3129_v9, %v3128_v18  ;;  %v2127_v6 = vpack.c.bf16 %v2116_v43, %v2115_v35  ;;  %v2085_v15 = vadd.f32 %v3277_v36, %v1988_v40  ;;  %v1902_v36 = vadd.f32 %v3072_v51, %v1805_v38  ;;  %v3468_v51 = vld [vmem:[%s3626_s23 + $0x30] sm:$0xf] }
 0x291   : > { %v3131_v60 = vpop.f32.mrf.mxu1  ;;  %v2140_v18 = vrot.slane %v2138_v55, 5  ;;  %v2144_v35 = vshll.u32 %v3465_v37, 16  ;;  %v2148_v43 = vshrl.u32 %v3465_v37, 16  ;;  %v2174_v40 = vrot.slane %v2172_v63, 4 }
 0x292   : > { %v1991_v52 = vadd.f32 %v3130_v20, %v1894_v25  ;;  %3307 = vmatprep.mubr.bf16.mxu1 %v2127_v6  ;;  %v2117_v54 = vmax.f32 %v2085_v15, 0.0  ;;  %v3467_v20 = vld [vmem:[%s3626_s23 + $0x14] sm:$0xf]  ;;  %v2255_v55 = vshrl.u32 %v3474_v47, 16  ;;  %v2258_v16 = vshll.u32 %v3474_v47, 16 }
 0x293   : > { %v3132_v57 = vpop.f32.mrf.mxu1  ;;  %v4845_v39 = vrot.slane %v2144_v35, 5  ;;  %v2150_v25 = vrot.slane %v2148_v43, 4  ;;  %v2154_v6 = vshll.u32 %v3467_v20, 16 }
 0x294   : > { %v2088_v14 = vadd.f32 %v3278_v59, %v1991_v52  ;;  %v3133_v10 = vadd.f32 %v3132_v57, %v3131_v60  ;;  %v2141_v60 = vor.u32 %v2140_v18, %v2137_v26  ;;  %v5249_v52 = vld [vmem:[#allocation3_spill] sm:$0xff]  ;;  %v3475_v18 = vld [vmem:[%s3626_s23 + $0x3c] sm:$0xf] }
 0x295   : > { %v3134_v27 = vpop.f32.mrf.mxu1  ;;  %v4853_v57 = vrot.slane %v2154_v6, 5  ;;  %v2231_v37 = vshrl.u32 %v3475_v18, 16  ;;  %v2234_v35 = vshll.u32 %v3475_v18, 16 }
 0x296   : > { %v2118_v31 = vmax.f32 %v2088_v14, 0.0  ;;  %v1996_v22 = vadd.f32 %v3133_v10, %v4773_v42  ;;  %v4850_v15 = vrot.slane %v2141_v60, 4 }
 0x297   : > { %v3135_v28 = vpop.f32.mrf.mxu1  ;;  %v2233_v6 = vrot.slane %v2231_v37, 4  ;;  %v2236_v60 = vrot.slane %v2234_v35, 5  ;;  %v3482_v35 = vld [vmem:[%s3626_s23 + $0x64] sm:$0xf] }
 0x298   : > { %v3136_v34 = vadd.f32 %v3135_v28, %v3134_v27  ;;  %v2128_v45 = vpack.c.bf16 %v2118_v31, %v2117_v54  ;;  %v2093_v29 = vadd.f32 %v2092_v24, %v1996_v22  ;;  %v2175_v24 = vor.u32 %v2174_v40, %v5249_v52  ;;  %v3469_v28 = vld [vmem:[%s3626_s23 + $0x24] sm:$0xf] }
 0x299   : > { %v3137_v56 = vpop.f32.mrf.mxu1  ;;  %v2147_v14 = vsel %vm4700_vm10, %v4850_v15, %v4845_v39  ;;  %v2151_v27 = vor.u32 %v2150_v25, %v4845_v39  ;;  %v2207_v54 = vshrl.u32 %v3468_v51, 16  ;;  %v2210_v31 = vshll.u32 %v3468_v51, 16 }
 0x29a   : > { %v1999_v1 = vadd.f32 %v3136_v34, %v1902_v36  ;;  %3308 = vmatmul.mubr.bf16.gmra.mxu1 %v2128_v45  ;;  %v2119_v0 = vmax.f32 %v2093_v29, 0.0  ;;  %v4859_v10 = vrot.slane %v2175_v24, 4  ;;  %v2183_v8 = vshrl.u32 %v3469_v28, 16  ;;  %v3477_v24 = vld [vmem:[%s3626_s23 + $0x40] sm:$0xf] }
 0x29b   : > { %v3138_v44 = vpop.f32.mrf.mxu1  ;;  %v2186_v36 = vshll.u32 %v3469_v28, 16  ;;  %v2209_v45 = vrot.slane %v2207_v54, 4  ;;  %v2216_v29 = vshll.u32 %v3470_v48, 16  ;;  %v2257_v40 = vrot.slane %v2255_v55, 4  ;;  %v3478_v28 = vld [vmem:[%s3626_s23 + $0x50] sm:$0xf] }
 0x29c   : > { %v2096_v62 = vadd.f32 %v2095_v41, %v1999_v1  ;;  %v3139_v42 = vadd.f32 %v3138_v44, %v3137_v56  ;;  %v2212_v56 = vrot.slane %v2210_v31, 5  ;;  %v2220_v1 = vshrl.u32 %v3470_v48, 16 }
 0x29d   : > { %v3140_v11 = vpop.f32.mrf.mxu1  ;;  %v2185_v41 = vrot.slane %v2183_v8, 4  ;;  %v2188_v44 = vrot.slane %v2186_v36, 5  ;;  %v2244_v51 = vshrl.u32 %v3477_v24, 16  ;;  %v2274_v8 = vshll.u32 %v3478_v28, 16 }
 0x29e   : > { %v2120_v3 = vmax.f32 %v2096_v62, 0.0  ;;  %v2004_v59 = vadd.f32 %v3139_v42, %v5247_v19  ;;  %v2192_v62 = vshll.u32 %v3471_v23, 16  ;;  %v2196_v42 = vshrl.u32 %v3471_v23, 16 }
 0x29f   : > { %v3141_v46 = vpop.f32.mrf.mxu1  ;;  %v2222_v50 = vrot.slane %v2220_v1, 4 }
 0x2a0   : > { %v3142_v53 = vadd.f32 %v3141_v46, %v3140_v11  ;;  %v2129_v30 = vpack.c.bf16 %v2120_v3, %v2119_v0  ;;  %v2101_v32 = vadd.f32 %v3281_v21, %v2004_v59  ;;  %v3466_v21 = vld [vmem:[%s3626_s23 + $0x20] sm:$0xf]  ;;  %v4876_v11 = vrot.slane %v2216_v29, 5  ;;  %v3473_v3 = vld [vmem:[%s3626_s23 + $0x2c] sm:$0xf] }
 0x2a1   : > { %v2178_v9 = vshll.u32 %v3466_v21, 16  ;;  %v2213_v0 = vor.u32 %v2212_v56, %v2209_v45  ;;  %v2202_v19 = vshll.u32 %v3473_v3, 16  ;;  %v4880_v59 = vrot.slane %v2192_v62, 5  ;;  %v3479_v45 = vld [vmem:[%s3626_s23 + $0x44] sm:$0xf] }
 0x2a2   : > { %v2007_v58 = vadd.f32 %v3142_v53, %v1910_v33  ;;  %3311 = vmatprep.mubr.bf16.mxu1 %v2129_v30  ;;  %v2121_v49 = vmax.f32 %v2101_v32, 0.0  ;;  %v2198_v46 = vrot.slane %v2196_v42, 4  ;;  %v2189_v53 = vor.u32 %v2188_v44, %v2185_v41  ;;  %v3480_v3 = vld [vmem:[%s3626_s23 + $0x60] sm:$0xf] }
 0x2a3   : > { %v4848_v7 = vrot.slane %v2178_v9, 5  ;;  %v4882_v33 = vrot.slane %v2213_v0, 4  ;;  %v4884_v30 = vrot.slane %v2226_v5, 5  ;;  %v2260_v21 = vrot.slane %v2258_v16, 5  ;;  %v3476_v9 = vld [vmem:[%s3626_s23 + $0x4c] sm:$0xf] }
 0x2a4   : > { %v2104_v17 = vadd.f32 %v3282_v2, %v2007_v58  ;;  %v4867_v2 = vrot.slane %v2151_v27, 4  ;;  %v4890_v58 = vrot.slane %v2189_v53, 4  ;;  %v2199_v61 = vor.u32 %v2198_v46, %v4880_v59 }
 0x2a5   : > { %v2181_v22 = vsel %vm4700_vm10, %v4859_v10, %v4848_v7  ;;  %v2219_v32 = vsel %vm4700_vm10, %v4882_v33, %v4876_v11  ;;  %v2264_v25 = vshll.u32 %v3476_v9, 16  ;;  %v2268_v20 = vshrl.u32 %v3476_v9, 16  ;;  %v3483_v9 = vld [vmem:[%s3626_s23 + $0x58] sm:$0xf] }
 0x2a6   : > { %v2122_v13 = vmax.f32 %v2104_v17, 0.0  ;;  %v2157_v34 = vsel %vm4700_vm10, %v4867_v2, %v4853_v57  ;;  %v2223_v17 = vor.u32 %v2222_v50, %v4876_v11  ;;  %v4907_v26 = vrot.slane %v2199_v61, 4  ;;  %v3481_v61 = vld [vmem:[%s3626_s23 + $0x54] sm:$0xf] }
 0x2a7   : > { %v2240_v27 = vshll.u32 %v3477_v24, 16  ;;  %v4916_v54 = vrot.slane %v2264_v25, 5  ;;  %v2270_v31 = vrot.slane %v2268_v20, 4  ;;  %v2261_v36 = vor.u32 %v2260_v21, %v2257_v40 }
 0x2a8   : > { %v2130_v4 = vpack.c.bf16 %v2122_v13, %v2121_v49  ;;  %v4893_v49 = vrot.slane %v2202_v19, 5  ;;  %v2195_v13 = vsel %vm4700_vm10, %v4890_v58, %v4880_v59  ;;  %v2250_v56 = vshll.u32 %v3479_v45, 16  ;;  %v3485_v45 = vld [vmem:[%s3626_s23 + $0x5c] sm:$0xf] }
 0x2a9   : > { %v4920_v48 = vrot.slane %v2240_v27, 5  ;;  %v2246_v29 = vrot.slane %v2244_v51, 4  ;;  %v4922_v1 = vrot.slane %v2261_v36, 4  ;;  %v2237_v41 = vor.u32 %v2236_v60, %v2233_v6  ;;  %v3484_v51 = vld [vmem:[%s3626_s23 + $0x68] sm:$0xf]  ;;  %s2680_s23 = sshll.u32 %s5266_s9, 1 }
 0x2aa   : > { %3312 = vmatmul.mubr.bf16.gmra.mxu1 %v2130_v4  ;;  %v4899_v4 = vrot.slane %v2223_v17, 4  ;;  %v2205_v43 = vsel %vm4700_vm10, %v4907_v26, %v4893_v49  ;;  %v4924_v44 = vrot.slane %v2274_v8, 5  ;;  %v2271_v42 = vor.u32 %v2270_v31, %v4916_v54  ;;  %s314_s16 = sadd.s32 %s2681_s15, %s2680_s23 }
 0x2ab   : > { %v2267_v23 = vsel %vm4700_vm10, %v4922_v1, %v4916_v54  ;;  %v4930_v62 = vrot.slane %v2237_v41, 4  ;;  %v4933_v50 = vrot.slane %v2250_v56, 5  ;;  %v2247_v0 = vor.u32 %v2246_v29, %v4920_v48  ;;  %s2682_s19 = sshll.u32 %s314_s16, 3 }
 0x2ac   : > { %v2229_v63 = vsel %vm4700_vm10, %v4899_v4, %v4884_v30  ;;  %v4939_v5 = vrot.slane %v2271_v42, 4  ;;  %v2303_v19 = vshrl.u32 %v3480_v3, 16  ;;  %v2306_v46 = vshll.u32 %v3480_v3, 16  ;;  %s5020_s20 = scalar_lea.vmem %s5139_s7, %s2682_s19 }
 0x2ad   : > { %v2243_v12 = vsel %vm4700_vm10, %v4930_v62, %v4920_v48  ;;  %v4947_v17 = vrot.slane %v2247_v0, 4  ;;  %v2279_v47 = vshrl.u32 %v3481_v61, 16  ;;  %v2282_v55 = vshll.u32 %v3481_v61, 16 }
 0x2ae   : > { %v2277_v53 = vsel %vm4700_vm10, %v4939_v5, %v4924_v44  ;;  %v2305_v18 = vrot.slane %v2303_v19, 4  ;;  %v2308_v37 = vrot.slane %v2306_v46, 5  ;;  %v2312_v40 = vshll.u32 %v3482_v35, 16 }
 0x2af   : > { %v2253_v16 = vsel %vm4700_vm10, %v4947_v17, %v4933_v50  ;;  %v2316_v21 = vshrl.u32 %v3482_v35, 16  ;;  %v2288_v25 = vshll.u32 %v3483_v9, 16  ;;  %v2281_v20 = vrot.slane %v2279_v47, 4 }
 0x2b0   : > { %v2284_v6 = vrot.slane %v2282_v55, 5  ;;  %v2292_v60 = vshrl.u32 %v3483_v9, 16  ;;  %v4956_v24 = vrot.slane %v2312_v40, 5  ;;  %v2322_v31 = vshll.u32 %v3484_v51, 16  ;;  %v4998_v40 = vld [vmem:[%s5138_s6] ss:$0 sm:$0xff] }
 0x2b1   : > { %v2318_v27 = vrot.slane %v2316_v21, 4  ;;  %v2309_v28 = vor.u32 %v2308_v37, %v2305_v18  ;;  %v4959_v8 = vrot.slane %v2288_v25, 5  ;;  %v2298_v56 = vshll.u32 %v3485_v45, 16  ;;  %v5251_v21 = vld [vmem:[#allocation5_spill] sm:$0xff] }
 0x2b2   : > { %v2294_v36 = vrot.slane %v2292_v60, 4  ;;  %v2285_v41 = vor.u32 %v2284_v6, %v2281_v20  ;;  %v4964_v42 = vrot.slane %v2322_v31, 5  ;;  %v5252_v9 = vsel %vm4700_vm10, %v5251_v21, %v5249_v52 }
 0x2b3   : > { %v4962_v29 = vrot.slane %v2309_v28, 4  ;;  %v2319_v19 = vor.u32 %v2318_v27, %v4956_v24  ;;  %v4973_v46 = vrot.slane %v2298_v56, 5  ;;  %v2344_v25 = vunpack.c.l.bf16 %v5252_v9 }
 0x2b4   : > { %v4970_v3 = vrot.slane %v2285_v41, 4  ;;  %v2295_v55 = vor.u32 %v2294_v36, %v4959_v8  ;;  %v2342_v60 = vunpack.c.l.bf16 %v2147_v14  ;;  %v2345_v52 = vunpack.c.l.bf16 %v2181_v22 }
 0x2b5   : > { %v2315_v0 = vsel %vm4700_vm10, %v4962_v29, %v4956_v24  ;;  %v4979_v47 = vrot.slane %v2319_v19, 4  ;;  %v2343_v7 = vunpack.c.l.bf16 %v2157_v34  ;;  %v2348_v57 = vunpack.c.l.bf16 %v2219_v32 }
 0x2b6   : > { %v2291_v61 = vsel %vm4700_vm10, %v4970_v3, %v4959_v8  ;;  %v4986_v37 = vrot.slane %v2295_v55, 4  ;;  %v2346_v55 = vunpack.c.l.bf16 %v2195_v13  ;;  %v2349_v11 = vunpack.c.l.bf16 %v2229_v63 }
 0x2b7   : > { %v2325_v18 = vsel %vm4700_vm10, %v4979_v47, %v4964_v42  ;;  %v2347_v59 = vunpack.c.l.bf16 %v2205_v43  ;;  %v2352_v49 = vunpack.c.l.bf16 %v2267_v23  ;;  %v2353_v54 = vunpack.c.l.bf16 %v2277_v53 }
 0x2b8   : > { %v2301_v35 = vsel %vm4700_vm10, %v4986_v37, %v4973_v46  ;;  %v2351_v48 = vunpack.c.l.bf16 %v2253_v16  ;;  %v2356_v50 = vunpack.c.l.bf16 %v2315_v0  ;;  %v2357_v24 = vunpack.c.l.bf16 %v2325_v18 }
 0x2b9   : > { %v2355_v8 = vunpack.c.l.bf16 %v2301_v35 }
 0x33a   : > { %v3301_v20 = vpop.f32.mrf.mxu1 }
 0x33b   : > { %v2472_v6 = vadd.f32 %v3301_v20, %v4998_v40 }
 0x33c   : > { %v2463_v27 = vpop.f32.mrf.mxu1 }
 0x33d   : > { %v2528_v51 = vadd.f32 %v2472_v6, %v2344_v25  ;;  %v2464_v31 = vadd.f32 %v4998_v40, %v2463_v27 }
 0x33e   : > { %v3302_v39 = vpop.f32.mrf.mxu1 }
 0x33f   : > { %v2544_v15 = vmax.f32 %v2528_v51, 0.0  ;;  %v2526_v14 = vadd.f32 %v2464_v31, %v2342_v60  ;;  %v2475_v28 = vadd.f32 %v3302_v39, %v4998_v40  ;;  %v2350_v51 = vunpack.c.l.bf16 %v2243_v12 }
 0x340   : > { %v2466_v10 = vpop.f32.mrf.mxu1 }
 0x341   : > { %2560 = vst [vmem:[%s5020_s20 + $0x10] sm:$0xff] %v2544_v15  ;;  %v2542_v22 = vmax.f32 %v2526_v14, 0.0  ;;  %v2529_v36 = vadd.f32 %v2475_v28, %v2345_v52  ;;  %v2467_v45 = vadd.f32 %v4998_v40, %v2466_v10  ;;  %v2354_v10 = vunpack.c.l.bf16 %v2291_v61 }
 0x343   : > { %2558 = vst [vmem:[%s5020_s20] sm:$0xff] %v2542_v22  ;;  %v2545_v56 = vmax.f32 %v2529_v36, 0.0  ;;  %v2527_v41 = vadd.f32 %v2467_v45, %v2343_v7 }
 0x345   : > { %2561 = vst [vmem:[%s5020_s20 + $0x18] sm:$0xff] %v2545_v56  ;;  %v2543_v19 = vmax.f32 %v2527_v41, 0.0 }
 0x347   : > { %2559 = vst [vmem:[%s5020_s20 + $0x8] sm:$0xff] %v2543_v19 }
 0x34a   : > { %v3305_v2 = vpop.f32.mrf.mxu1 }
 0x34b   : > { %v2488_v34 = vadd.f32 %v3305_v2, %v4998_v40 }
 0x34c   : > { %v2479_v21 = vpop.f32.mrf.mxu1 }
 0x34d   : > { %v2532_v9 = vadd.f32 %v2488_v34, %v2348_v57  ;;  %v2480_v25 = vadd.f32 %v4998_v40, %v2479_v21 }
 0x34e   : > { %v3306_v33 = vpop.f32.mrf.mxu1 }
 0x34f   : > { %v2548_v32 = vmax.f32 %v2532_v9, 0.0  ;;  %v2530_v20 = vadd.f32 %v2480_v25, %v2346_v55  ;;  %v2491_v6 = vadd.f32 %v3306_v33, %v4998_v40 }
 0x350   : > { %v2482_v58 = vpop.f32.mrf.mxu1 }
 0x351   : > { %2564 = vst [vmem:[%s5020_s20 + $0x30] sm:$0xff] %v2548_v32  ;;  %v2546_v13 = vmax.f32 %v2530_v20, 0.0  ;;  %v2533_v60 = vadd.f32 %v2491_v6, %v2349_v11  ;;  %v2483_v27 = vadd.f32 %v4998_v40, %v2482_v58 }
 0x353   : > { %2562 = vst [vmem:[%s5020_s20 + $0x20] sm:$0xff] %v2546_v13  ;;  %v2549_v30 = vmax.f32 %v2533_v60, 0.0  ;;  %v2531_v4 = vadd.f32 %v2483_v27, %v2347_v59 }
 0x355   : > { %2565 = vst [vmem:[%s5020_s20 + $0x38] sm:$0xff] %v2549_v30  ;;  %v2547_v63 = vmax.f32 %v2531_v4, 0.0 }
 0x357   : > { %2563 = vst [vmem:[%s5020_s20 + $0x28] sm:$0xff] %v2547_v63 }
 0x35a   : > { %v3309_v26 = vpop.f32.mrf.mxu1 }
 0x35b   : > { %v2504_v43 = vadd.f32 %v3309_v26, %v4998_v40 }
 0x35c   : > { %v2495_v31 = vpop.f32.mrf.mxu1 }
 0x35d   : > { %v2536_v52 = vadd.f32 %v2504_v43, %v2352_v49  ;;  %v2496_v39 = vadd.f32 %v4998_v40, %v2495_v31 }
 0x35e   : > { %v3310_v1 = vpop.f32.mrf.mxu1 }
 0x35f   : > { %v2552_v23 = vmax.f32 %v2536_v52, 0.0  ;;  %v2534_v15 = vadd.f32 %v2496_v39, %v2350_v51  ;;  %v2507_v14 = vadd.f32 %v3310_v1, %v4998_v40 }
 0x360   : > { %v2498_v62 = vpop.f32.mrf.mxu1 }
 0x361   : > { %2568 = vst [vmem:[%s5020_s20 + $0x50] sm:$0xff] %v2552_v23  ;;  %v2550_v12 = vmax.f32 %v2534_v15, 0.0  ;;  %v2537_v28 = vadd.f32 %v2507_v14, %v2353_v54  ;;  %v2499_v7 = vadd.f32 %v4998_v40, %v2498_v62 }
 0x363   : > { %2566 = vst [vmem:[%s5020_s20 + $0x40] sm:$0xff] %v2550_v12  ;;  %v2553_v44 = vmax.f32 %v2537_v28, 0.0  ;;  %v2535_v5 = vadd.f32 %v2499_v7, %v2351_v48 }
 0x365   : > { %2569 = vst [vmem:[%s5020_s20 + $0x58] sm:$0xff] %v2553_v44  ;;  %v2551_v53 = vmax.f32 %v2535_v5, 0.0 }
 0x367   : > { %2567 = vst [vmem:[%s5020_s20 + $0x48] sm:$0xff] %v2551_v53 }
 0x36a   : > { %v3313_v17 = vpop.f32.mrf.mxu1 }
 0x36b   : > { %v2520_v16 = vadd.f32 %v3313_v17, %v4998_v40 }
 0x36c   : > { %v2511_v22 = vpop.f32.mrf.mxu1 }
 0x36d   : > { %v2540_v36 = vadd.f32 %v2520_v16, %v2356_v50  ;;  %v2512_v45 = vadd.f32 %v4998_v40, %v2511_v22 }
 0x36e   : > { %v3314_v29 = vpop.f32.mrf.mxu1 }
 0x36f   : > { %v2556_v0 = vmax.f32 %v2540_v36, 0.0  ;;  %v2538_v56 = vadd.f32 %v2512_v45, %v2354_v10  ;;  %v2523_v41 = vadd.f32 %v3314_v29, %v4998_v40 }
 0x370   : > { %v2514_v3 = vpop.f32.mrf.mxu1 }
 0x371   : > { %2572 = vst [vmem:[%s5020_s20 + $0x70] sm:$0xff] %v2556_v0  ;;  %v2554_v61 = vmax.f32 %v2538_v56, 0.0  ;;  %v2541_v19 = vadd.f32 %v2523_v41, %v2357_v24  ;;  %v2515_v57 = vadd.f32 %v4998_v40, %v2514_v3 }
 0x373   : > { %2570 = vst [vmem:[%s5020_s20 + $0x60] sm:$0xff] %v2554_v61  ;;  %v2557_v42 = vmax.f32 %v2541_v19, 0.0  ;;  %v2539_v47 = vadd.f32 %v2515_v57, %v2355_v8 }
 0x375   : > { %2573 = vst [vmem:[%s5020_s20 + $0x78] sm:$0xff] %v2557_v42  ;;  %v2555_v18 = vmax.f32 %v2539_v47, 0.0 }
 0x377   : > { %2571 = vst [vmem:[%s5020_s20 + $0x68] sm:$0xff] %v2555_v18 }
 0x378 PF: > { %s17_s28 = sadd.s32 1, %s3524_s28   ;;  %s5253_s24 = smov %s3516_s26 }
 0x379   : > { %p14_p8 = scmp.ge.s32.totalorder %s17_s28, 6   ;;  %s5254_s25 = smov %s3520_s27 }
 0x37a   : > { %s5255_s26 = smov %s5258_s29  ;;  %s5256_s27 = smov %s5262_s30 }
 0x37b   :  { %16 = sbr.rel (!%p14_p8) target bundleno = 3 (0x3), region = 78 }

</bundles_post_ra>
